<compile_context>
chip_gen: v6e
topology: v6e:2x2x1
jax: 0.10.0
libtpu: 0.0.40
codegen_flags: <defaults>
</compile_context>

<pallas_src>
import functools

import jax
import jax.numpy as jnp
from jax.experimental import pallas as pl
from jax.experimental.pallas import tpu as pltpu


# ----------------------------------------------------------------------------
# Pallas kernel: hoisted input projection + 2-layer LSTM recurrence + fc
# ----------------------------------------------------------------------------
def _lstm_fc_kernel(x_ref,      # (T*Bp, D)   bf16  time-major, batch-padded
                    wih0_ref,   # (D, 4H)     bf16  layer0 input->gates
                    whh0_ref,   # (H, 4H)     bf16  layer0 hidden->gates
                    b0_ref,     # (1, 4H)     f32   layer0 combined bias
                    wih1_ref,   # (H, 4H)     bf16  layer1 input->gates
                    whh1_ref,   # (H, 4H)     bf16  layer1 hidden->gates
                    b1_ref,     # (1, 4H)     f32   layer1 combined bias
                    wfc_ref,    # (H, OUTp)   bf16  fc weight (lane-padded)
                    bfc_ref,    # (1, OUTp)   f32   fc bias   (lane-padded)
                    out_ref,    # (Bp, OUTp)  f32   lane/sublane-dense output
                    *, T, B, H):
    # --- Hoisted layer-0 input projection: independent of h, so it is taken
    # off the serial chain and done for all T steps with one MXU matmul. ---
    xg0 = (jnp.dot(x_ref[...], wih0_ref[...],
                   preferred_element_type=jnp.float32)
           + b0_ref[...])                               # (T*Bp, 4H) f32

    # Load the recurrent weights once; they stay resident across the loop.
    whh0 = whh0_ref[...]
    wih1 = wih1_ref[...]
    whh1 = whh1_ref[...]
    b1 = b1_ref[...]

    def gates_to_hc(gates, c):
        # Full-vreg EUP calls over all 4H (=128) lanes, then static lane
        # slices.  PyTorch gate order: i, f, g, o.
        sig = jax.nn.sigmoid(gates)
        th = jnp.tanh(gates)
        i = sig[:, 0 * H:1 * H]
        f = sig[:, 1 * H:2 * H]
        g = th[:, 2 * H:3 * H]
        o = sig[:, 3 * H:4 * H]
        c_new = f * c + i * g
        h_new = o * jnp.tanh(c_new)
        return h_new, c_new

    bf16 = jnp.bfloat16
    h0 = jnp.zeros((B, H), jnp.float32)
    c0 = jnp.zeros((B, H), jnp.float32)
    h1 = jnp.zeros((B, H), jnp.float32)
    c1 = jnp.zeros((B, H), jnp.float32)

    # T is static & tiny -> fully unrolled recurrence (same codegen as
    # lax.fori_loop(..., unroll=True)); xg0 slices are static & vreg-aligned.
    for t in range(T):
        # Layer 0: only the recurrent projection sits on the serial chain.
        g0 = (xg0[t * B:(t + 1) * B, :]
              + jnp.dot(h0.astype(bf16), whh0,
                        preferred_element_type=jnp.float32))
        h0, c0 = gates_to_hc(g0, c0)

        # Layer 1 consumes layer-0 output at this time step.
        g1 = (jnp.dot(h0.astype(bf16), wih1,
                      preferred_element_type=jnp.float32)
              + jnp.dot(h1.astype(bf16), whh1,
                        preferred_element_type=jnp.float32)
              + b1)
        h1, c1 = gates_to_hc(g1, c1)

    # Final Linear on the last hidden state of the top layer (dense store).
    out_ref[...] = (jnp.dot(h1.astype(bf16), wfc_ref[...],
                            preferred_element_type=jnp.float32)
                    + bfc_ref[...]).astype(out_ref.dtype)


# ----------------------------------------------------------------------------
# Wrapper: embedding gather + layout/padding glue, single pallas_call
# ----------------------------------------------------------------------------
def lstm_red_forward(tokens, params):
    """tokens: int32 (B, T, I) with values in [0, num_classes)."""
    emb = params["embedding"]                      # (num_classes, E)
    B, T, I = tokens.shape
    E = emb.shape[1]
    D = I * E
    H = params["whh0_T"].shape[0]
    OUT = params["wfc_T"].shape[1]

    Bp = -(-B // 8) * 8            # sublane-pad batch
    OUTp = -(-OUT // 128) * 128    # lane-pad fc output

    # Glue (embedding gather + layout) left to XLA; tiny table.
    x = jnp.take(emb, tokens, axis=0).reshape(B, T, D)
    x_tm = jnp.transpose(x, (1, 0, 2))                     # (T, B, D)
    x_tm = jnp.pad(x_tm, ((0, 0), (0, Bp - B), (0, 0)))    # (T, Bp, D)
    x2d = x_tm.reshape(T * Bp, D).astype(jnp.bfloat16)     # (T*Bp, D)

    bf16 = lambda w: w.astype(jnp.bfloat16)
    wfc_p = jnp.pad(params["wfc_T"], ((0, 0), (0, OUTp - OUT)))
    bfc_p = jnp.pad(params["bfc"], ((0, 0), (0, OUTp - OUT)))

    kernel = functools.partial(_lstm_fc_kernel, T=T, B=Bp, H=H)
    vmem = pl.BlockSpec(memory_space=pltpu.MemorySpace.VMEM)

    out_p = pl.pallas_call(
        kernel,
        out_shape=jax.ShapeDtypeStruct((Bp, OUTp), jnp.float32),
        in_specs=[vmem] * 9,
        out_specs=vmem,
    )(x2d,
      bf16(params["wih0_T"]), bf16(params["whh0_T"]), params["b0"],
      bf16(params["wih1_T"]), bf16(params["whh1_T"]), params["b1"],
      bf16(wfc_p), bfc_p)

    return out_p[:B, :OUT]


# ----------------------------------------------------------------------------
# Pure-JAX reference with matched matmul precision (bf16 inputs, f32 accum)
# ----------------------------------------------------------------------------
def lstm_red_reference(tokens, params):
    emb = params["embedding"]
    B, T, I = tokens.shape
    E = emb.shape[1]
    H = params["whh0_T"].shape[0]
    x = jnp.take(emb, tokens, axis=0).reshape(B, T, I * E)

    def bdot(a, w):
        return jnp.dot(a.astype(jnp.bfloat16), w.astype(jnp.bfloat16),
                       preferred_element_type=jnp.float32)

    def cell(x_t, h, c, wih_T, whh_T, b):
        g = bdot(x_t, wih_T) + bdot(h, whh_T) + b
        i, f, gg, o = jnp.split(g, 4, axis=-1)
        c_new = jax.nn.sigmoid(f) * c + jax.nn.sigmoid(i) * jnp.tanh(gg)
        h_new = jax.nn.sigmoid(o) * jnp.tanh(c_new)
        return h_new, c_new

    h0 = jnp.zeros((B, H), jnp.float32); c0 = jnp.zeros((B, H), jnp.float32)
    h1 = jnp.zeros((B, H), jnp.float32); c1 = jnp.zeros((B, H), jnp.float32)
    for t in range(T):
        h0, c0 = cell(x[:, t, :], h0, c0,
                      params["wih0_T"], params["whh0_T"], params["b0"])
        h1, c1 = cell(h0, h1, c1,
                      params["wih1_T"], params["whh1_T"], params["b1"])
    return bdot(h1, params["wfc_T"]) + params["bfc"]


# ----------------------------------------------------------------------------
# Deterministic parameter construction (matches module shapes / init scheme)
# ----------------------------------------------------------------------------
def init_params(key, input_size, embedding_size, hidden_size, num_classes):
    D = input_size * embedding_size
    H = hidden_size
    OUT = num_classes * input_size
    ks = jax.random.split(key, 8)

    xavier = jax.nn.initializers.glorot_uniform()
    ortho = jax.nn.initializers.orthogonal()

    # PyTorch shapes: weight_ih_l0 (4H, D), weight_hh_l0 (4H, H), etc.
    wih0 = xavier(ks[0], (4 * H, D), jnp.float32)
    whh0 = ortho(ks[1], (4 * H, H), jnp.float32)
    wih1 = xavier(ks[2], (4 * H, H), jnp.float32)
    whh1 = ortho(ks[3], (4 * H, H), jnp.float32)
    # biases zero-initialised (b_ih + b_hh combined)
    b0 = jnp.zeros((1, 4 * H), jnp.float32)
    b1 = jnp.zeros((1, 4 * H), jnp.float32)

    embedding = jax.random.normal(ks[4], (num_classes, embedding_size),
                                  jnp.float32)
    bound = 1.0 / jnp.sqrt(H)
    wfc = jax.random.uniform(ks[5], (OUT, H), jnp.float32, -bound, bound)
    bfc = jnp.zeros((1, OUT), jnp.float32)   # 'bias' init -> zeros

    return {
        "embedding": embedding,
        "wih0_T": wih0.T, "whh0_T": whh0.T, "b0": b0,
        "wih1_T": wih1.T, "whh1_T": whh1.T, "b1": b1,
        "wfc_T": wfc.T, "bfc": bfc,
    }


if __name__ == "__main__":
    # Small shapes consistent with the module's forward.
    batch, seq, input_size = 2, 8, 4
    embedding_size, hidden_size, num_classes = 8, 32, 6

    key = jax.random.PRNGKey(0)
    k_tok, k_par = jax.random.split(key)
    tokens = jax.random.randint(k_tok, (batch, seq, input_size), 0, num_classes,
                                dtype=jnp.int32)
    params = init_params(k_par, input_size, embedding_size, hidden_size,
                         num_classes)

    out = jax.jit(lstm_red_forward)(tokens, params)
    out = jax.block_until_ready(out)

    ref = lstm_red_reference(tokens, params)
    assert out.shape == (batch, num_classes * input_size)
    # bf16 matmul inputs with f32 accumulation are the intended numerics (perf
    # review); compare against a matched-precision reference.
    assert jnp.allclose(out, ref, atol=1e-2, rtol=1e-2), "mismatch vs reference"

    print("KERNEL_OK")
</pallas_src>

<mosaic_0001>
module attributes {stable_mosaic.version = 11 : i64} {
  func.func @_lstm_fc_kernel(%arg0: memref<64x32xbf16, #tpu.memory_space<vmem>>, %arg1: memref<32x128xbf16, #tpu.memory_space<vmem>>, %arg2: memref<32x128xbf16, #tpu.memory_space<vmem>>, %arg3: memref<1x128xf32, #tpu.memory_space<vmem>>, %arg4: memref<32x128xbf16, #tpu.memory_space<vmem>>, %arg5: memref<32x128xbf16, #tpu.memory_space<vmem>>, %arg6: memref<1x128xf32, #tpu.memory_space<vmem>>, %arg7: memref<32x128xbf16, #tpu.memory_space<vmem>>, %arg8: memref<1x128xf32, #tpu.memory_space<vmem>>, %arg9: memref<8x128xf32, #tpu.memory_space<vmem>>) attributes {dimension_semantics = [], scalar_prefetch = 0 : i64, scratch_operands = 0 : i64, tpu.core_type = #tpu.core_type<tc>} {
    %c0 = arith.constant 0 : index
    %c0_0 = arith.constant 0 : index
    %0 = vector.load %arg0[%c0, %c0_0] : memref<64x32xbf16, #tpu.memory_space<vmem>>, vector<64x32xbf16>
    %c0_1 = arith.constant 0 : index
    %c0_2 = arith.constant 0 : index
    %1 = vector.load %arg1[%c0_1, %c0_2] : memref<32x128xbf16, #tpu.memory_space<vmem>>, vector<32x128xbf16>
    %cst = arith.constant dense<0.000000e+00> : vector<64x128xf32>
    %2 = tpu.matmul %0, %1, %cst {dimension_numbers = #tpu.dot_dimension_numbers<[1], [0], [0], [1], [0, 0, 1, 1], [], []>} : vector<64x32xbf16>, vector<32x128xbf16>, vector<64x128xf32> -> vector<64x128xf32>
    %c0_3 = arith.constant 0 : index
    %c0_4 = arith.constant 0 : index
    %3 = vector.load %arg3[%c0_3, %c0_4] : memref<1x128xf32, #tpu.memory_space<vmem>>, vector<1x128xf32>
    %4 = vector.broadcast %3 : vector<1x128xf32> to vector<64x128xf32>
    %5 = arith.addf %2, %4 : vector<64x128xf32>
    %c0_5 = arith.constant 0 : index
    %c0_6 = arith.constant 0 : index
    %6 = vector.load %arg2[%c0_5, %c0_6] : memref<32x128xbf16, #tpu.memory_space<vmem>>, vector<32x128xbf16>
    %c0_7 = arith.constant 0 : index
    %c0_8 = arith.constant 0 : index
    %7 = vector.load %arg4[%c0_7, %c0_8] : memref<32x128xbf16, #tpu.memory_space<vmem>>, vector<32x128xbf16>
    %c0_9 = arith.constant 0 : index
    %c0_10 = arith.constant 0 : index
    %8 = vector.load %arg5[%c0_9, %c0_10] : memref<32x128xbf16, #tpu.memory_space<vmem>>, vector<32x128xbf16>
    %c0_11 = arith.constant 0 : index
    %c0_12 = arith.constant 0 : index
    %9 = vector.load %arg6[%c0_11, %c0_12] : memref<1x128xf32, #tpu.memory_space<vmem>>, vector<1x128xf32>
    %cst_13 = arith.constant 0.000000e+00 : f32
    %10 = vector.broadcast %cst_13 : f32 to vector<8x32xf32>
    %cst_14 = arith.constant 0.000000e+00 : f32
    %11 = vector.broadcast %cst_14 : f32 to vector<8x32xf32>
    %cst_15 = arith.constant 0.000000e+00 : f32
    %12 = vector.broadcast %cst_15 : f32 to vector<8x32xf32>
    %cst_16 = arith.constant 0.000000e+00 : f32
    %13 = vector.broadcast %cst_16 : f32 to vector<8x32xf32>
    %14 = vector.extract_strided_slice %5 {offsets = [0, 0], sizes = [8, 128], strides = [1, 1]} : vector<64x128xf32> to vector<8x128xf32>
    %15 = arith.truncf %10 : vector<8x32xf32> to vector<8x32xbf16>
    %cst_17 = arith.constant dense<0.000000e+00> : vector<8x128xf32>
    %16 = tpu.matmul %15, %6, %cst_17 {dimension_numbers = #tpu.dot_dimension_numbers<[1], [0], [0], [1], [0, 0, 1, 1], [], []>} : vector<8x32xbf16>, vector<32x128xbf16>, vector<8x128xf32> -> vector<8x128xf32>
    %17 = arith.addf %14, %16 : vector<8x128xf32>
    %18 = arith.negf %17 : vector<8x128xf32>
    %19 = math.exp %18 : vector<8x128xf32>
    %cst_18 = arith.constant 1.000000e+00 : f32
    %20 = vector.broadcast %cst_18 : f32 to vector<8x128xf32>
    %21 = arith.addf %20, %19 : vector<8x128xf32>
    %22 = arith.divf %20, %21 : vector<8x128xf32>
    %23 = math.tanh %17 : vector<8x128xf32>
    %24 = vector.extract_strided_slice %22 {offsets = [0, 0], sizes = [8, 32], strides = [1, 1]} : vector<8x128xf32> to vector<8x32xf32>
    %25 = vector.extract_strided_slice %22 {offsets = [0, 32], sizes = [8, 32], strides = [1, 1]} : vector<8x128xf32> to vector<8x32xf32>
    %26 = vector.extract_strided_slice %23 {offsets = [0, 64], sizes = [8, 32], strides = [1, 1]} : vector<8x128xf32> to vector<8x32xf32>
    %27 = vector.extract_strided_slice %22 {offsets = [0, 96], sizes = [8, 32], strides = [1, 1]} : vector<8x128xf32> to vector<8x32xf32>
    %28 = arith.mulf %25, %11 : vector<8x32xf32>
    %29 = arith.mulf %24, %26 : vector<8x32xf32>
    %30 = arith.addf %28, %29 : vector<8x32xf32>
    %31 = math.tanh %30 : vector<8x32xf32>
    %32 = arith.mulf %27, %31 : vector<8x32xf32>
    %33 = arith.truncf %32 : vector<8x32xf32> to vector<8x32xbf16>
    %cst_19 = arith.constant dense<0.000000e+00> : vector<8x128xf32>
    %34 = tpu.matmul %33, %7, %cst_19 {dimension_numbers = #tpu.dot_dimension_numbers<[1], [0], [0], [1], [0, 0, 1, 1], [], []>} : vector<8x32xbf16>, vector<32x128xbf16>, vector<8x128xf32> -> vector<8x128xf32>
    %35 = arith.truncf %12 : vector<8x32xf32> to vector<8x32xbf16>
    %cst_20 = arith.constant dense<0.000000e+00> : vector<8x128xf32>
    %36 = tpu.matmul %35, %8, %cst_20 {dimension_numbers = #tpu.dot_dimension_numbers<[1], [0], [0], [1], [0, 0, 1, 1], [], []>} : vector<8x32xbf16>, vector<32x128xbf16>, vector<8x128xf32> -> vector<8x128xf32>
    %37 = arith.addf %34, %36 : vector<8x128xf32>
    %38 = vector.broadcast %9 : vector<1x128xf32> to vector<8x128xf32>
    %39 = arith.addf %37, %38 : vector<8x128xf32>
    %40 = arith.negf %39 : vector<8x128xf32>
    %41 = math.exp %40 : vector<8x128xf32>
    %cst_21 = arith.constant 1.000000e+00 : f32
    %42 = vector.broadcast %cst_21 : f32 to vector<8x128xf32>
    %43 = arith.addf %42, %41 : vector<8x128xf32>
    %44 = arith.divf %42, %43 : vector<8x128xf32>
    %45 = math.tanh %39 : vector<8x128xf32>
    %46 = vector.extract_strided_slice %44 {offsets = [0, 0], sizes = [8, 32], strides = [1, 1]} : vector<8x128xf32> to vector<8x32xf32>
    %47 = vector.extract_strided_slice %44 {offsets = [0, 32], sizes = [8, 32], strides = [1, 1]} : vector<8x128xf32> to vector<8x32xf32>
    %48 = vector.extract_strided_slice %45 {offsets = [0, 64], sizes = [8, 32], strides = [1, 1]} : vector<8x128xf32> to vector<8x32xf32>
    %49 = vector.extract_strided_slice %44 {offsets = [0, 96], sizes = [8, 32], strides = [1, 1]} : vector<8x128xf32> to vector<8x32xf32>
    %50 = arith.mulf %47, %13 : vector<8x32xf32>
    %51 = arith.mulf %46, %48 : vector<8x32xf32>
    %52 = arith.addf %50, %51 : vector<8x32xf32>
    %53 = math.tanh %52 : vector<8x32xf32>
    %54 = arith.mulf %49, %53 : vector<8x32xf32>
    %55 = vector.extract_strided_slice %5 {offsets = [8, 0], sizes = [8, 128], strides = [1, 1]} : vector<64x128xf32> to vector<8x128xf32>
    %56 = arith.truncf %32 : vector<8x32xf32> to vector<8x32xbf16>
    %cst_22 = arith.constant dense<0.000000e+00> : vector<8x128xf32>
    %57 = tpu.matmul %56, %6, %cst_22 {dimension_numbers = #tpu.dot_dimension_numbers<[1], [0], [0], [1], [0, 0, 1, 1], [], []>} : vector<8x32xbf16>, vector<32x128xbf16>, vector<8x128xf32> -> vector<8x128xf32>
    %58 = arith.addf %55, %57 : vector<8x128xf32>
    %59 = arith.negf %58 : vector<8x128xf32>
    %60 = math.exp %59 : vector<8x128xf32>
    %cst_23 = arith.constant 1.000000e+00 : f32
    %61 = vector.broadcast %cst_23 : f32 to vector<8x128xf32>
    %62 = arith.addf %61, %60 : vector<8x128xf32>
    %63 = arith.divf %61, %62 : vector<8x128xf32>
    %64 = math.tanh %58 : vector<8x128xf32>
    %65 = vector.extract_strided_slice %63 {offsets = [0, 0], sizes = [8, 32], strides = [1, 1]} : vector<8x128xf32> to vector<8x32xf32>
    %66 = vector.extract_strided_slice %63 {offsets = [0, 32], sizes = [8, 32], strides = [1, 1]} : vector<8x128xf32> to vector<8x32xf32>
    %67 = vector.extract_strided_slice %64 {offsets = [0, 64], sizes = [8, 32], strides = [1, 1]} : vector<8x128xf32> to vector<8x32xf32>
    %68 = vector.extract_strided_slice %63 {offsets = [0, 96], sizes = [8, 32], strides = [1, 1]} : vector<8x128xf32> to vector<8x32xf32>
    %69 = arith.mulf %66, %30 : vector<8x32xf32>
    %70 = arith.mulf %65, %67 : vector<8x32xf32>
    %71 = arith.addf %69, %70 : vector<8x32xf32>
    %72 = math.tanh %71 : vector<8x32xf32>
    %73 = arith.mulf %68, %72 : vector<8x32xf32>
    %74 = arith.truncf %73 : vector<8x32xf32> to vector<8x32xbf16>
    %cst_24 = arith.constant dense<0.000000e+00> : vector<8x128xf32>
    %75 = tpu.matmul %74, %7, %cst_24 {dimension_numbers = #tpu.dot_dimension_numbers<[1], [0], [0], [1], [0, 0, 1, 1], [], []>} : vector<8x32xbf16>, vector<32x128xbf16>, vector<8x128xf32> -> vector<8x128xf32>
    %76 = arith.truncf %54 : vector<8x32xf32> to vector<8x32xbf16>
    %cst_25 = arith.constant dense<0.000000e+00> : vector<8x128xf32>
    %77 = tpu.matmul %76, %8, %cst_25 {dimension_numbers = #tpu.dot_dimension_numbers<[1], [0], [0], [1], [0, 0, 1, 1], [], []>} : vector<8x32xbf16>, vector<32x128xbf16>, vector<8x128xf32> -> vector<8x128xf32>
    %78 = arith.addf %75, %77 : vector<8x128xf32>
    %79 = vector.broadcast %9 : vector<1x128xf32> to vector<8x128xf32>
    %80 = arith.addf %78, %79 : vector<8x128xf32>
    %81 = arith.negf %80 : vector<8x128xf32>
    %82 = math.exp %81 : vector<8x128xf32>
    %cst_26 = arith.constant 1.000000e+00 : f32
    %83 = vector.broadcast %cst_26 : f32 to vector<8x128xf32>
    %84 = arith.addf %83, %82 : vector<8x128xf32>
    %85 = arith.divf %83, %84 : vector<8x128xf32>
    %86 = math.tanh %80 : vector<8x128xf32>
    %87 = vector.extract_strided_slice %85 {offsets = [0, 0], sizes = [8, 32], strides = [1, 1]} : vector<8x128xf32> to vector<8x32xf32>
    %88 = vector.extract_strided_slice %85 {offsets = [0, 32], sizes = [8, 32], strides = [1, 1]} : vector<8x128xf32> to vector<8x32xf32>
    %89 = vector.extract_strided_slice %86 {offsets = [0, 64], sizes = [8, 32], strides = [1, 1]} : vector<8x128xf32> to vector<8x32xf32>
    %90 = vector.extract_strided_slice %85 {offsets = [0, 96], sizes = [8, 32], strides = [1, 1]} : vector<8x128xf32> to vector<8x32xf32>
    %91 = arith.mulf %88, %52 : vector<8x32xf32>
    %92 = arith.mulf %87, %89 : vector<8x32xf32>
    %93 = arith.addf %91, %92 : vector<8x32xf32>
    %94 = math.tanh %93 : vector<8x32xf32>
    %95 = arith.mulf %90, %94 : vector<8x32xf32>
    %96 = vector.extract_strided_slice %5 {offsets = [16, 0], sizes = [8, 128], strides = [1, 1]} : vector<64x128xf32> to vector<8x128xf32>
    %97 = arith.truncf %73 : vector<8x32xf32> to vector<8x32xbf16>
    %cst_27 = arith.constant dense<0.000000e+00> : vector<8x128xf32>
    %98 = tpu.matmul %97, %6, %cst_27 {dimension_numbers = #tpu.dot_dimension_numbers<[1], [0], [0], [1], [0, 0, 1, 1], [], []>} : vector<8x32xbf16>, vector<32x128xbf16>, vector<8x128xf32> -> vector<8x128xf32>
    %99 = arith.addf %96, %98 : vector<8x128xf32>
    %100 = arith.negf %99 : vector<8x128xf32>
    %101 = math.exp %100 : vector<8x128xf32>
    %cst_28 = arith.constant 1.000000e+00 : f32
    %102 = vector.broadcast %cst_28 : f32 to vector<8x128xf32>
    %103 = arith.addf %102, %101 : vector<8x128xf32>
    %104 = arith.divf %102, %103 : vector<8x128xf32>
    %105 = math.tanh %99 : vector<8x128xf32>
    %106 = vector.extract_strided_slice %104 {offsets = [0, 0], sizes = [8, 32], strides = [1, 1]} : vector<8x128xf32> to vector<8x32xf32>
    %107 = vector.extract_strided_slice %104 {offsets = [0, 32], sizes = [8, 32], strides = [1, 1]} : vector<8x128xf32> to vector<8x32xf32>
    %108 = vector.extract_strided_slice %105 {offsets = [0, 64], sizes = [8, 32], strides = [1, 1]} : vector<8x128xf32> to vector<8x32xf32>
    %109 = vector.extract_strided_slice %104 {offsets = [0, 96], sizes = [8, 32], strides = [1, 1]} : vector<8x128xf32> to vector<8x32xf32>
    %110 = arith.mulf %107, %71 : vector<8x32xf32>
    %111 = arith.mulf %106, %108 : vector<8x32xf32>
    %112 = arith.addf %110, %111 : vector<8x32xf32>
    %113 = math.tanh %112 : vector<8x32xf32>
    %114 = arith.mulf %109, %113 : vector<8x32xf32>
    %115 = arith.truncf %114 : vector<8x32xf32> to vector<8x32xbf16>
    %cst_29 = arith.constant dense<0.000000e+00> : vector<8x128xf32>
    %116 = tpu.matmul %115, %7, %cst_29 {dimension_numbers = #tpu.dot_dimension_numbers<[1], [0], [0], [1], [0, 0, 1, 1], [], []>} : vector<8x32xbf16>, vector<32x128xbf16>, vector<8x128xf32> -> vector<8x128xf32>
    %117 = arith.truncf %95 : vector<8x32xf32> to vector<8x32xbf16>
    %cst_30 = arith.constant dense<0.000000e+00> : vector<8x128xf32>
    %118 = tpu.matmul %117, %8, %cst_30 {dimension_numbers = #tpu.dot_dimension_numbers<[1], [0], [0], [1], [0, 0, 1, 1], [], []>} : vector<8x32xbf16>, vector<32x128xbf16>, vector<8x128xf32> -> vector<8x128xf32>
    %119 = arith.addf %116, %118 : vector<8x128xf32>
    %120 = vector.broadcast %9 : vector<1x128xf32> to vector<8x128xf32>
    %121 = arith.addf %119, %120 : vector<8x128xf32>
    %122 = arith.negf %121 : vector<8x128xf32>
    %123 = math.exp %122 : vector<8x128xf32>
    %cst_31 = arith.constant 1.000000e+00 : f32
    %124 = vector.broadcast %cst_31 : f32 to vector<8x128xf32>
    %125 = arith.addf %124, %123 : vector<8x128xf32>
    %126 = arith.divf %124, %125 : vector<8x128xf32>
    %127 = math.tanh %121 : vector<8x128xf32>
    %128 = vector.extract_strided_slice %126 {offsets = [0, 0], sizes = [8, 32], strides = [1, 1]} : vector<8x128xf32> to vector<8x32xf32>
    %129 = vector.extract_strided_slice %126 {offsets = [0, 32], sizes = [8, 32], strides = [1, 1]} : vector<8x128xf32> to vector<8x32xf32>
    %130 = vector.extract_strided_slice %127 {offsets = [0, 64], sizes = [8, 32], strides = [1, 1]} : vector<8x128xf32> to vector<8x32xf32>
    %131 = vector.extract_strided_slice %126 {offsets = [0, 96], sizes = [8, 32], strides = [1, 1]} : vector<8x128xf32> to vector<8x32xf32>
    %132 = arith.mulf %129, %93 : vector<8x32xf32>
    %133 = arith.mulf %128, %130 : vector<8x32xf32>
    %134 = arith.addf %132, %133 : vector<8x32xf32>
    %135 = math.tanh %134 : vector<8x32xf32>
    %136 = arith.mulf %131, %135 : vector<8x32xf32>
    %137 = vector.extract_strided_slice %5 {offsets = [24, 0], sizes = [8, 128], strides = [1, 1]} : vector<64x128xf32> to vector<8x128xf32>
    %138 = arith.truncf %114 : vector<8x32xf32> to vector<8x32xbf16>
    %cst_32 = arith.constant dense<0.000000e+00> : vector<8x128xf32>
    %139 = tpu.matmul %138, %6, %cst_32 {dimension_numbers = #tpu.dot_dimension_numbers<[1], [0], [0], [1], [0, 0, 1, 1], [], []>} : vector<8x32xbf16>, vector<32x128xbf16>, vector<8x128xf32> -> vector<8x128xf32>
    %140 = arith.addf %137, %139 : vector<8x128xf32>
    %141 = arith.negf %140 : vector<8x128xf32>
    %142 = math.exp %141 : vector<8x128xf32>
    %cst_33 = arith.constant 1.000000e+00 : f32
    %143 = vector.broadcast %cst_33 : f32 to vector<8x128xf32>
    %144 = arith.addf %143, %142 : vector<8x128xf32>
    %145 = arith.divf %143, %144 : vector<8x128xf32>
    %146 = math.tanh %140 : vector<8x128xf32>
    %147 = vector.extract_strided_slice %145 {offsets = [0, 0], sizes = [8, 32], strides = [1, 1]} : vector<8x128xf32> to vector<8x32xf32>
    %148 = vector.extract_strided_slice %145 {offsets = [0, 32], sizes = [8, 32], strides = [1, 1]} : vector<8x128xf32> to vector<8x32xf32>
    %149 = vector.extract_strided_slice %146 {offsets = [0, 64], sizes = [8, 32], strides = [1, 1]} : vector<8x128xf32> to vector<8x32xf32>
    %150 = vector.extract_strided_slice %145 {offsets = [0, 96], sizes = [8, 32], strides = [1, 1]} : vector<8x128xf32> to vector<8x32xf32>
    %151 = arith.mulf %148, %112 : vector<8x32xf32>
    %152 = arith.mulf %147, %149 : vector<8x32xf32>
    %153 = arith.addf %151, %152 : vector<8x32xf32>
    %154 = math.tanh %153 : vector<8x32xf32>
    %155 = arith.mulf %150, %154 : vector<8x32xf32>
    %156 = arith.truncf %155 : vector<8x32xf32> to vector<8x32xbf16>
    %cst_34 = arith.constant dense<0.000000e+00> : vector<8x128xf32>
    %157 = tpu.matmul %156, %7, %cst_34 {dimension_numbers = #tpu.dot_dimension_numbers<[1], [0], [0], [1], [0, 0, 1, 1], [], []>} : vector<8x32xbf16>, vector<32x128xbf16>, vector<8x128xf32> -> vector<8x128xf32>
    %158 = arith.truncf %136 : vector<8x32xf32> to vector<8x32xbf16>
    %cst_35 = arith.constant dense<0.000000e+00> : vector<8x128xf32>
    %159 = tpu.matmul %158, %8, %cst_35 {dimension_numbers = #tpu.dot_dimension_numbers<[1], [0], [0], [1], [0, 0, 1, 1], [], []>} : vector<8x32xbf16>, vector<32x128xbf16>, vector<8x128xf32> -> vector<8x128xf32>
    %160 = arith.addf %157, %159 : vector<8x128xf32>
    %161 = vector.broadcast %9 : vector<1x128xf32> to vector<8x128xf32>
    %162 = arith.addf %160, %161 : vector<8x128xf32>
    %163 = arith.negf %162 : vector<8x128xf32>
    %164 = math.exp %163 : vector<8x128xf32>
    %cst_36 = arith.constant 1.000000e+00 : f32
    %165 = vector.broadcast %cst_36 : f32 to vector<8x128xf32>
    %166 = arith.addf %165, %164 : vector<8x128xf32>
    %167 = arith.divf %165, %166 : vector<8x128xf32>
    %168 = math.tanh %162 : vector<8x128xf32>
    %169 = vector.extract_strided_slice %167 {offsets = [0, 0], sizes = [8, 32], strides = [1, 1]} : vector<8x128xf32> to vector<8x32xf32>
    %170 = vector.extract_strided_slice %167 {offsets = [0, 32], sizes = [8, 32], strides = [1, 1]} : vector<8x128xf32> to vector<8x32xf32>
    %171 = vector.extract_strided_slice %168 {offsets = [0, 64], sizes = [8, 32], strides = [1, 1]} : vector<8x128xf32> to vector<8x32xf32>
    %172 = vector.extract_strided_slice %167 {offsets = [0, 96], sizes = [8, 32], strides = [1, 1]} : vector<8x128xf32> to vector<8x32xf32>
    %173 = arith.mulf %170, %134 : vector<8x32xf32>
    %174 = arith.mulf %169, %171 : vector<8x32xf32>
    %175 = arith.addf %173, %174 : vector<8x32xf32>
    %176 = math.tanh %175 : vector<8x32xf32>
    %177 = arith.mulf %172, %176 : vector<8x32xf32>
    %178 = vector.extract_strided_slice %5 {offsets = [32, 0], sizes = [8, 128], strides = [1, 1]} : vector<64x128xf32> to vector<8x128xf32>
    %179 = arith.truncf %155 : vector<8x32xf32> to vector<8x32xbf16>
    %cst_37 = arith.constant dense<0.000000e+00> : vector<8x128xf32>
    %180 = tpu.matmul %179, %6, %cst_37 {dimension_numbers = #tpu.dot_dimension_numbers<[1], [0], [0], [1], [0, 0, 1, 1], [], []>} : vector<8x32xbf16>, vector<32x128xbf16>, vector<8x128xf32> -> vector<8x128xf32>
    %181 = arith.addf %178, %180 : vector<8x128xf32>
    %182 = arith.negf %181 : vector<8x128xf32>
    %183 = math.exp %182 : vector<8x128xf32>
    %cst_38 = arith.constant 1.000000e+00 : f32
    %184 = vector.broadcast %cst_38 : f32 to vector<8x128xf32>
    %185 = arith.addf %184, %183 : vector<8x128xf32>
    %186 = arith.divf %184, %185 : vector<8x128xf32>
    %187 = math.tanh %181 : vector<8x128xf32>
    %188 = vector.extract_strided_slice %186 {offsets = [0, 0], sizes = [8, 32], strides = [1, 1]} : vector<8x128xf32> to vector<8x32xf32>
    %189 = vector.extract_strided_slice %186 {offsets = [0, 32], sizes = [8, 32], strides = [1, 1]} : vector<8x128xf32> to vector<8x32xf32>
    %190 = vector.extract_strided_slice %187 {offsets = [0, 64], sizes = [8, 32], strides = [1, 1]} : vector<8x128xf32> to vector<8x32xf32>
    %191 = vector.extract_strided_slice %186 {offsets = [0, 96], sizes = [8, 32], strides = [1, 1]} : vector<8x128xf32> to vector<8x32xf32>
    %192 = arith.mulf %189, %153 : vector<8x32xf32>
    %193 = arith.mulf %188, %190 : vector<8x32xf32>
    %194 = arith.addf %192, %193 : vector<8x32xf32>
    %195 = math.tanh %194 : vector<8x32xf32>
    %196 = arith.mulf %191, %195 : vector<8x32xf32>
    %197 = arith.truncf %196 : vector<8x32xf32> to vector<8x32xbf16>
    %cst_39 = arith.constant dense<0.000000e+00> : vector<8x128xf32>
    %198 = tpu.matmul %197, %7, %cst_39 {dimension_numbers = #tpu.dot_dimension_numbers<[1], [0], [0], [1], [0, 0, 1, 1], [], []>} : vector<8x32xbf16>, vector<32x128xbf16>, vector<8x128xf32> -> vector<8x128xf32>
    %199 = arith.truncf %177 : vector<8x32xf32> to vector<8x32xbf16>
    %cst_40 = arith.constant dense<0.000000e+00> : vector<8x128xf32>
    %200 = tpu.matmul %199, %8, %cst_40 {dimension_numbers = #tpu.dot_dimension_numbers<[1], [0], [0], [1], [0, 0, 1, 1], [], []>} : vector<8x32xbf16>, vector<32x128xbf16>, vector<8x128xf32> -> vector<8x128xf32>
    %201 = arith.addf %198, %200 : vector<8x128xf32>
    %202 = vector.broadcast %9 : vector<1x128xf32> to vector<8x128xf32>
    %203 = arith.addf %201, %202 : vector<8x128xf32>
    %204 = arith.negf %203 : vector<8x128xf32>
    %205 = math.exp %204 : vector<8x128xf32>
    %cst_41 = arith.constant 1.000000e+00 : f32
    %206 = vector.broadcast %cst_41 : f32 to vector<8x128xf32>
    %207 = arith.addf %206, %205 : vector<8x128xf32>
    %208 = arith.divf %206, %207 : vector<8x128xf32>
    %209 = math.tanh %203 : vector<8x128xf32>
    %210 = vector.extract_strided_slice %208 {offsets = [0, 0], sizes = [8, 32], strides = [1, 1]} : vector<8x128xf32> to vector<8x32xf32>
    %211 = vector.extract_strided_slice %208 {offsets = [0, 32], sizes = [8, 32], strides = [1, 1]} : vector<8x128xf32> to vector<8x32xf32>
    %212 = vector.extract_strided_slice %209 {offsets = [0, 64], sizes = [8, 32], strides = [1, 1]} : vector<8x128xf32> to vector<8x32xf32>
    %213 = vector.extract_strided_slice %208 {offsets = [0, 96], sizes = [8, 32], strides = [1, 1]} : vector<8x128xf32> to vector<8x32xf32>
    %214 = arith.mulf %211, %175 : vector<8x32xf32>
    %215 = arith.mulf %210, %212 : vector<8x32xf32>
    %216 = arith.addf %214, %215 : vector<8x32xf32>
    %217 = math.tanh %216 : vector<8x32xf32>
    %218 = arith.mulf %213, %217 : vector<8x32xf32>
    %219 = vector.extract_strided_slice %5 {offsets = [40, 0], sizes = [8, 128], strides = [1, 1]} : vector<64x128xf32> to vector<8x128xf32>
    %220 = arith.truncf %196 : vector<8x32xf32> to vector<8x32xbf16>
    %cst_42 = arith.constant dense<0.000000e+00> : vector<8x128xf32>
    %221 = tpu.matmul %220, %6, %cst_42 {dimension_numbers = #tpu.dot_dimension_numbers<[1], [0], [0], [1], [0, 0, 1, 1], [], []>} : vector<8x32xbf16>, vector<32x128xbf16>, vector<8x128xf32> -> vector<8x128xf32>
    %222 = arith.addf %219, %221 : vector<8x128xf32>
    %223 = arith.negf %222 : vector<8x128xf32>
    %224 = math.exp %223 : vector<8x128xf32>
    %cst_43 = arith.constant 1.000000e+00 : f32
    %225 = vector.broadcast %cst_43 : f32 to vector<8x128xf32>
    %226 = arith.addf %225, %224 : vector<8x128xf32>
    %227 = arith.divf %225, %226 : vector<8x128xf32>
    %228 = math.tanh %222 : vector<8x128xf32>
    %229 = vector.extract_strided_slice %227 {offsets = [0, 0], sizes = [8, 32], strides = [1, 1]} : vector<8x128xf32> to vector<8x32xf32>
    %230 = vector.extract_strided_slice %227 {offsets = [0, 32], sizes = [8, 32], strides = [1, 1]} : vector<8x128xf32> to vector<8x32xf32>
    %231 = vector.extract_strided_slice %228 {offsets = [0, 64], sizes = [8, 32], strides = [1, 1]} : vector<8x128xf32> to vector<8x32xf32>
    %232 = vector.extract_strided_slice %227 {offsets = [0, 96], sizes = [8, 32], strides = [1, 1]} : vector<8x128xf32> to vector<8x32xf32>
    %233 = arith.mulf %230, %194 : vector<8x32xf32>
    %234 = arith.mulf %229, %231 : vector<8x32xf32>
    %235 = arith.addf %233, %234 : vector<8x32xf32>
    %236 = math.tanh %235 : vector<8x32xf32>
    %237 = arith.mulf %232, %236 : vector<8x32xf32>
    %238 = arith.truncf %237 : vector<8x32xf32> to vector<8x32xbf16>
    %cst_44 = arith.constant dense<0.000000e+00> : vector<8x128xf32>
    %239 = tpu.matmul %238, %7, %cst_44 {dimension_numbers = #tpu.dot_dimension_numbers<[1], [0], [0], [1], [0, 0, 1, 1], [], []>} : vector<8x32xbf16>, vector<32x128xbf16>, vector<8x128xf32> -> vector<8x128xf32>
    %240 = arith.truncf %218 : vector<8x32xf32> to vector<8x32xbf16>
    %cst_45 = arith.constant dense<0.000000e+00> : vector<8x128xf32>
    %241 = tpu.matmul %240, %8, %cst_45 {dimension_numbers = #tpu.dot_dimension_numbers<[1], [0], [0], [1], [0, 0, 1, 1], [], []>} : vector<8x32xbf16>, vector<32x128xbf16>, vector<8x128xf32> -> vector<8x128xf32>
    %242 = arith.addf %239, %241 : vector<8x128xf32>
    %243 = vector.broadcast %9 : vector<1x128xf32> to vector<8x128xf32>
    %244 = arith.addf %242, %243 : vector<8x128xf32>
    %245 = arith.negf %244 : vector<8x128xf32>
    %246 = math.exp %245 : vector<8x128xf32>
    %cst_46 = arith.constant 1.000000e+00 : f32
    %247 = vector.broadcast %cst_46 : f32 to vector<8x128xf32>
    %248 = arith.addf %247, %246 : vector<8x128xf32>
    %249 = arith.divf %247, %248 : vector<8x128xf32>
    %250 = math.tanh %244 : vector<8x128xf32>
    %251 = vector.extract_strided_slice %249 {offsets = [0, 0], sizes = [8, 32], strides = [1, 1]} : vector<8x128xf32> to vector<8x32xf32>
    %252 = vector.extract_strided_slice %249 {offsets = [0, 32], sizes = [8, 32], strides = [1, 1]} : vector<8x128xf32> to vector<8x32xf32>
    %253 = vector.extract_strided_slice %250 {offsets = [0, 64], sizes = [8, 32], strides = [1, 1]} : vector<8x128xf32> to vector<8x32xf32>
    %254 = vector.extract_strided_slice %249 {offsets = [0, 96], sizes = [8, 32], strides = [1, 1]} : vector<8x128xf32> to vector<8x32xf32>
    %255 = arith.mulf %252, %216 : vector<8x32xf32>
    %256 = arith.mulf %251, %253 : vector<8x32xf32>
    %257 = arith.addf %255, %256 : vector<8x32xf32>
    %258 = math.tanh %257 : vector<8x32xf32>
    %259 = arith.mulf %254, %258 : vector<8x32xf32>
    %260 = vector.extract_strided_slice %5 {offsets = [48, 0], sizes = [8, 128], strides = [1, 1]} : vector<64x128xf32> to vector<8x128xf32>
    %261 = arith.truncf %237 : vector<8x32xf32> to vector<8x32xbf16>
    %cst_47 = arith.constant dense<0.000000e+00> : vector<8x128xf32>
    %262 = tpu.matmul %261, %6, %cst_47 {dimension_numbers = #tpu.dot_dimension_numbers<[1], [0], [0], [1], [0, 0, 1, 1], [], []>} : vector<8x32xbf16>, vector<32x128xbf16>, vector<8x128xf32> -> vector<8x128xf32>
    %263 = arith.addf %260, %262 : vector<8x128xf32>
    %264 = arith.negf %263 : vector<8x128xf32>
    %265 = math.exp %264 : vector<8x128xf32>
    %cst_48 = arith.constant 1.000000e+00 : f32
    %266 = vector.broadcast %cst_48 : f32 to vector<8x128xf32>
    %267 = arith.addf %266, %265 : vector<8x128xf32>
    %268 = arith.divf %266, %267 : vector<8x128xf32>
    %269 = math.tanh %263 : vector<8x128xf32>
    %270 = vector.extract_strided_slice %268 {offsets = [0, 0], sizes = [8, 32], strides = [1, 1]} : vector<8x128xf32> to vector<8x32xf32>
    %271 = vector.extract_strided_slice %268 {offsets = [0, 32], sizes = [8, 32], strides = [1, 1]} : vector<8x128xf32> to vector<8x32xf32>
    %272 = vector.extract_strided_slice %269 {offsets = [0, 64], sizes = [8, 32], strides = [1, 1]} : vector<8x128xf32> to vector<8x32xf32>
    %273 = vector.extract_strided_slice %268 {offsets = [0, 96], sizes = [8, 32], strides = [1, 1]} : vector<8x128xf32> to vector<8x32xf32>
    %274 = arith.mulf %271, %235 : vector<8x32xf32>
    %275 = arith.mulf %270, %272 : vector<8x32xf32>
    %276 = arith.addf %274, %275 : vector<8x32xf32>
    %277 = math.tanh %276 : vector<8x32xf32>
    %278 = arith.mulf %273, %277 : vector<8x32xf32>
    %279 = arith.truncf %278 : vector<8x32xf32> to vector<8x32xbf16>
    %cst_49 = arith.constant dense<0.000000e+00> : vector<8x128xf32>
    %280 = tpu.matmul %279, %7, %cst_49 {dimension_numbers = #tpu.dot_dimension_numbers<[1], [0], [0], [1], [0, 0, 1, 1], [], []>} : vector<8x32xbf16>, vector<32x128xbf16>, vector<8x128xf32> -> vector<8x128xf32>
    %281 = arith.truncf %259 : vector<8x32xf32> to vector<8x32xbf16>
    %cst_50 = arith.constant dense<0.000000e+00> : vector<8x128xf32>
    %282 = tpu.matmul %281, %8, %cst_50 {dimension_numbers = #tpu.dot_dimension_numbers<[1], [0], [0], [1], [0, 0, 1, 1], [], []>} : vector<8x32xbf16>, vector<32x128xbf16>, vector<8x128xf32> -> vector<8x128xf32>
    %283 = arith.addf %280, %282 : vector<8x128xf32>
    %284 = vector.broadcast %9 : vector<1x128xf32> to vector<8x128xf32>
    %285 = arith.addf %283, %284 : vector<8x128xf32>
    %286 = arith.negf %285 : vector<8x128xf32>
    %287 = math.exp %286 : vector<8x128xf32>
    %cst_51 = arith.constant 1.000000e+00 : f32
    %288 = vector.broadcast %cst_51 : f32 to vector<8x128xf32>
    %289 = arith.addf %288, %287 : vector<8x128xf32>
    %290 = arith.divf %288, %289 : vector<8x128xf32>
    %291 = math.tanh %285 : vector<8x128xf32>
    %292 = vector.extract_strided_slice %290 {offsets = [0, 0], sizes = [8, 32], strides = [1, 1]} : vector<8x128xf32> to vector<8x32xf32>
    %293 = vector.extract_strided_slice %290 {offsets = [0, 32], sizes = [8, 32], strides = [1, 1]} : vector<8x128xf32> to vector<8x32xf32>
    %294 = vector.extract_strided_slice %291 {offsets = [0, 64], sizes = [8, 32], strides = [1, 1]} : vector<8x128xf32> to vector<8x32xf32>
    %295 = vector.extract_strided_slice %290 {offsets = [0, 96], sizes = [8, 32], strides = [1, 1]} : vector<8x128xf32> to vector<8x32xf32>
    %296 = arith.mulf %293, %257 : vector<8x32xf32>
    %297 = arith.mulf %292, %294 : vector<8x32xf32>
    %298 = arith.addf %296, %297 : vector<8x32xf32>
    %299 = math.tanh %298 : vector<8x32xf32>
    %300 = arith.mulf %295, %299 : vector<8x32xf32>
    %301 = vector.extract_strided_slice %5 {offsets = [56, 0], sizes = [8, 128], strides = [1, 1]} : vector<64x128xf32> to vector<8x128xf32>
    %302 = arith.truncf %278 : vector<8x32xf32> to vector<8x32xbf16>
    %cst_52 = arith.constant dense<0.000000e+00> : vector<8x128xf32>
    %303 = tpu.matmul %302, %6, %cst_52 {dimension_numbers = #tpu.dot_dimension_numbers<[1], [0], [0], [1], [0, 0, 1, 1], [], []>} : vector<8x32xbf16>, vector<32x128xbf16>, vector<8x128xf32> -> vector<8x128xf32>
    %304 = arith.addf %301, %303 : vector<8x128xf32>
    %305 = arith.negf %304 : vector<8x128xf32>
    %306 = math.exp %305 : vector<8x128xf32>
    %cst_53 = arith.constant 1.000000e+00 : f32
    %307 = vector.broadcast %cst_53 : f32 to vector<8x128xf32>
    %308 = arith.addf %307, %306 : vector<8x128xf32>
    %309 = arith.divf %307, %308 : vector<8x128xf32>
    %310 = math.tanh %304 : vector<8x128xf32>
    %311 = vector.extract_strided_slice %309 {offsets = [0, 0], sizes = [8, 32], strides = [1, 1]} : vector<8x128xf32> to vector<8x32xf32>
    %312 = vector.extract_strided_slice %309 {offsets = [0, 32], sizes = [8, 32], strides = [1, 1]} : vector<8x128xf32> to vector<8x32xf32>
    %313 = vector.extract_strided_slice %310 {offsets = [0, 64], sizes = [8, 32], strides = [1, 1]} : vector<8x128xf32> to vector<8x32xf32>
    %314 = vector.extract_strided_slice %309 {offsets = [0, 96], sizes = [8, 32], strides = [1, 1]} : vector<8x128xf32> to vector<8x32xf32>
    %315 = arith.mulf %312, %276 : vector<8x32xf32>
    %316 = arith.mulf %311, %313 : vector<8x32xf32>
    %317 = arith.addf %315, %316 : vector<8x32xf32>
    %318 = math.tanh %317 : vector<8x32xf32>
    %319 = arith.mulf %314, %318 : vector<8x32xf32>
    %320 = arith.truncf %319 : vector<8x32xf32> to vector<8x32xbf16>
    %cst_54 = arith.constant dense<0.000000e+00> : vector<8x128xf32>
    %321 = tpu.matmul %320, %7, %cst_54 {dimension_numbers = #tpu.dot_dimension_numbers<[1], [0], [0], [1], [0, 0, 1, 1], [], []>} : vector<8x32xbf16>, vector<32x128xbf16>, vector<8x128xf32> -> vector<8x128xf32>
    %322 = arith.truncf %300 : vector<8x32xf32> to vector<8x32xbf16>
    %cst_55 = arith.constant dense<0.000000e+00> : vector<8x128xf32>
    %323 = tpu.matmul %322, %8, %cst_55 {dimension_numbers = #tpu.dot_dimension_numbers<[1], [0], [0], [1], [0, 0, 1, 1], [], []>} : vector<8x32xbf16>, vector<32x128xbf16>, vector<8x128xf32> -> vector<8x128xf32>
    %324 = arith.addf %321, %323 : vector<8x128xf32>
    %325 = vector.broadcast %9 : vector<1x128xf32> to vector<8x128xf32>
    %326 = arith.addf %324, %325 : vector<8x128xf32>
    %327 = arith.negf %326 : vector<8x128xf32>
    %328 = math.exp %327 : vector<8x128xf32>
    %cst_56 = arith.constant 1.000000e+00 : f32
    %329 = vector.broadcast %cst_56 : f32 to vector<8x128xf32>
    %330 = arith.addf %329, %328 : vector<8x128xf32>
    %331 = arith.divf %329, %330 : vector<8x128xf32>
    %332 = math.tanh %326 : vector<8x128xf32>
    %333 = vector.extract_strided_slice %331 {offsets = [0, 0], sizes = [8, 32], strides = [1, 1]} : vector<8x128xf32> to vector<8x32xf32>
    %334 = vector.extract_strided_slice %331 {offsets = [0, 32], sizes = [8, 32], strides = [1, 1]} : vector<8x128xf32> to vector<8x32xf32>
    %335 = vector.extract_strided_slice %332 {offsets = [0, 64], sizes = [8, 32], strides = [1, 1]} : vector<8x128xf32> to vector<8x32xf32>
    %336 = vector.extract_strided_slice %331 {offsets = [0, 96], sizes = [8, 32], strides = [1, 1]} : vector<8x128xf32> to vector<8x32xf32>
    %337 = arith.mulf %334, %298 : vector<8x32xf32>
    %338 = arith.mulf %333, %335 : vector<8x32xf32>
    %339 = arith.addf %337, %338 : vector<8x32xf32>
    %340 = math.tanh %339 : vector<8x32xf32>
    %341 = arith.mulf %336, %340 : vector<8x32xf32>
    %342 = arith.truncf %341 : vector<8x32xf32> to vector<8x32xbf16>
    %c0_57 = arith.constant 0 : index
    %c0_58 = arith.constant 0 : index
    %343 = vector.load %arg7[%c0_57, %c0_58] : memref<32x128xbf16, #tpu.memory_space<vmem>>, vector<32x128xbf16>
    %cst_59 = arith.constant dense<0.000000e+00> : vector<8x128xf32>
    %344 = tpu.matmul %342, %343, %cst_59 {dimension_numbers = #tpu.dot_dimension_numbers<[1], [0], [0], [1], [0, 0, 1, 1], [], []>} : vector<8x32xbf16>, vector<32x128xbf16>, vector<8x128xf32> -> vector<8x128xf32>
    %c0_60 = arith.constant 0 : index
    %c0_61 = arith.constant 0 : index
    %345 = vector.load %arg8[%c0_60, %c0_61] : memref<1x128xf32, #tpu.memory_space<vmem>>, vector<1x128xf32>
    %346 = vector.broadcast %345 : vector<1x128xf32> to vector<8x128xf32>
    %347 = arith.addf %344, %346 : vector<8x128xf32>
    %c0_62 = arith.constant 0 : index
    %c0_63 = arith.constant 0 : index
    %348 = vector.load %arg9[%c0_62, %c0_63] : memref<8x128xf32, #tpu.memory_space<vmem>>, vector<8x128xf32>
    tpu.vector_store %arg9[%c0_62, %c0_63], %347 {strides = array<i32>} : memref<8x128xf32, #tpu.memory_space<vmem>>, vector<8x128xf32>,
    return
  }
}

</mosaic_0001>

<bundles_post_ra>
// kernel: lstm_red_forward.1
= control target key start
LH: loop header
LB: loop body
LE: loop exit
PB: predicated region body
PF: predicated region fallthrough
CT: control target
= control target key end

     0   :  { %v2268_v0 = vmov 0.0   ;;  %vm2269_vm0 = vmmov 0   ;;  %vm84_vm1 = vcmask 261120   ;;  %v2270_v7 = vmov 0   ;;  %s2271_s22 = smov 64   ;;  %s2272_s23 = smov 32   ;;  %s2734_s1 = inlined_call_operand.vmem [shape: bf16[32,128], index: 1, kind: input, shape index: {}]   ;;  %s2735_s2 = inlined_call_operand.vmem [shape: bf16[32,128], index: 2, kind: input, shape index: {}]   ;;  %s2736_s0 = inlined_call_operand.vmem [shape: bf16[64,32], index: 0, kind: input, shape index: {}]   ;;  %s2737_s3 = inlined_call_operand.vmem [shape: f32[1,128], index: 3, kind: input, shape index: {}]   ;;  %s2738_s5 = inlined_call_operand.vmem [shape: bf16[32,128], index: 5, kind: input, shape index: {}]   ;;  %s2739_s4 = inlined_call_operand.vmem [shape: bf16[32,128], index: 4, kind: input, shape index: {}]   ;;  %s2740_s6 = inlined_call_operand.vmem [shape: f32[1,128], index: 6, kind: input, shape index: {}]   ;;  %s2741_s7 = inlined_call_operand.vmem [shape: bf16[32,128], index: 7, kind: input, shape index: {}]   ;;  %s2742_s8 = inlined_call_operand.vmem [shape: f32[1,128], index: 8, kind: input, shape index: {}]   ;;  %s2743_s9 = inlined_call_operand.vmem [shape: f32[8,128], index: 9, kind: output, shape index: {}]  }
   0x1   :  { %1913 = vmatprep.subr.bf16.mxu1 %v2268_v0  ;;  %v2118_v1 = vld [vmem:[%s2734_s1 + $0x8] sm:$0xff]   ;;  %1917 = vmatprep.mubr.msk.bf16.mxu1 %vm2269_vm0, %v2268_v0  ;;  %v2120_v3 = vld [vmem:[%s2734_s1] sm:$0xff]   ;;  %v2126_v27 = vld [vmem:[%s2736_s0 + $0x10] sm:$0xff]  }
   0x2   :  { %v2332_v2 = vld [vmem:[%s2735_s2 + $0x8] sm:$0xff]   ;;  %1901 = vmatprep.subr.bf16.mxu0 %v2118_v1  ;;  %v2341_v4 = vld [vmem:[%s2735_s2] sm:$0xff]   ;;  %v2128_v28 = vld [vmem:[%s2736_s0 + $0x18] sm:$0xff]  }
   0x3   :  { %1914 = vmatpush3.bf16.msra.mxu1 %v2332_v2  ;;  %1902 = vmatpush3.bf16.msra.mxu0 %v2118_v1  ;;  %v2122_v5 = vld [vmem:[%s2736_s0] sm:$0xff]   ;;  %v2123_v6 = vld [vmem:[%s2736_s0 + $0x8] sm:$0xff]  }
   0x4   :  { %1915 = vmatprep.subr.bf16.mxu1 %v2268_v0  ;;  %1903 = vmatprep.subr.bf16.mxu0 %v2120_v3  ;;  %v2362_v10 = vld [vmem:[%s2737_s3] ss:$0 sm:$0xff]  ;;  %v2379_v29 = vld [vmem:[%s2738_s5 + $0x8] sm:$0xff]  }
   0x5   :  { %1905 = vmatprep.mubr.msk.bf16.mxu0 %vm84_vm1, %v2122_v5  ;;  %v2384_v30 = vld [vmem:[%s2739_s4 + $0x8] sm:$0xff]   ;;  %v2391_v31 = vld [vmem:[%s2738_s5] sm:$0xff]  }
   0x6   :  { %v2399_v32 = vld [vmem:[%s2739_s4] sm:$0xff]  }
   0x7   :  { %1916 = vmatpush3.bf16.msra.mxu1 %v2341_v4  ;;  %1904 = vmatpush3.bf16.msra.mxu0 %v2120_v3  ;;  %v2444_v49 = vld [vmem:[%s2740_s6] ss:$0 sm:$0xff] }
   0x8   :  { %1921 = vmatprep.subr.bf16.mxu1 %v2268_v0  ;;  %1929 = vmatprep.subr.bf16.mxu0 %v2268_v0 }
   0xa   :  { %1918 = vmatmul.mubr.bf16.vlgmr.msra.gmra.mxu1 %v2270_v7  ;;  %1906 = vmatmul.mubr.msk.bf16.vlgmr.msra.gmra.mxu0 %vm84_vm1, %v2123_v6 }
   0xb   :  { %1925 = vmatprep.mubr.msk.bf16.mxu1 %vm2269_vm0, %v2268_v0  ;;  %1909 = vmatprep.mubr.msk.bf16.mxu0 %vm84_vm1, %v2126_v27 }
   0xc   :  { %1922 = vmatpush3.bf16.msra.mxu1 %v2379_v29  ;;  %1930 = vmatpush3.bf16.msra.mxu0 %v2384_v30 }
   0xd   :  { %1923 = vmatprep.subr.bf16.mxu1 %v2268_v0  ;;  %1931 = vmatprep.subr.bf16.mxu0 %v2268_v0 }
  0x10   :  { %1924 = vmatpush3.bf16.msra.mxu1 %v2391_v31  ;;  %1932 = vmatpush3.bf16.msra.mxu0 %v2399_v32 }
  0x11   :  { %1937 = vmatprep.subr.bf16.mxu1 %v2268_v0  ;;  %1945 = vmatprep.subr.bf16.mxu0 %v2268_v0 }
  0x12   :  { %1910 = vmatmul.mubr.msk.bf16.gmra.mxu0 %vm84_vm1, %v2128_v28 }
  0x13   :  { %1933 = vmatprep.mubr.msk.bf16.mxu0 %vm2269_vm0, %v2268_v0  ;;  %1926 = vmatmul.mubr.bf16.vlgmr.msra.gmra.mxu1 %v2270_v7 }
  0x14   :  { %1938 = vmatpush3.bf16.msra.mxu1 %v2332_v2  ;;  %1941 = vmatprep.mubr.msk.bf16.mxu1 %vm2269_vm0, %v2268_v0 }
  0x15   :  { %1939 = vmatprep.subr.bf16.mxu1 %v2268_v0 }
  0x18   :  { %1940 = vmatpush3.bf16.msra.mxu1 %v2341_v4 }
  0x19   :  { %1953 = vmatprep.subr.bf16.mxu1 %v2268_v0 }
  0xca   :  { %v224_v8 = vpop.f32.mrf.mxu1  ;;  %v2357_v9 = vpop.f32.mrf.mxu0 }
  0xcc   :  { %v1919_v11 = vpop.f32.mrf.mxu1  ;;  %v131_v12 = vpop.f32.mrf.mxu0 }
  0xcd   :  { %v132_v13 = vadd.f32 %v2362_v10, %v131_v12 }
  0xce   :  { %v227_v14 = vpop.f32.mrf.mxu1  ;;  %v2430_v42 = vpop.f32.mrf.mxu0 }
  0xcf   :  { %v230_v15 = vadd.f32 %v224_v8, %v132_v13 }
  0xd0   :  { %v1920_v16 = vpop.f32.mrf.mxu1  ;;  %v134_v43 = vpop.f32.mrf.mxu0 }
  0xd1   :  { %2132 = vtanh.f32 %v230_v15  ;;  %v1773_v18 = vmul.f32 -1.442695, %v230_v15  ;;  %v135_v48 = vadd.f32 %v2362_v10, %v134_v43 }
  0xd2   :  { %v2432_v44 = vpop.f32.mrf.mxu0 }
  0xd3   :  { %2134 = vpow2.f32 %v1773_v18  ;;  %v302_v37 = vpop.f32.mrf.mxu1 }
  0xd4   :  { %v2434_v45 = vpop.f32.mrf.mxu0 }
  0xd5   :  { %v1927_v38 = vpop.f32.mrf.mxu1 }
  0xd6   :  { %v2436_v46 = vpop.f32.mrf.mxu0 }
  0xd7   :  { %v305_v39 = vpop.f32.mrf.mxu1 }
  0xd8   :  { %v2438_v47 = vpop.f32.mrf.mxu0 }
  0xd9   :  { %v1928_v40 = vpop.f32.mrf.mxu1 }
  0xde   :  { %v2133_v17 = vpop.eup %2132 }
  0xdf   :  { %240 = vrot.lane.b32.xlu0 %v2133_v17, %s2271_s22 }
  0xe0   :  { %v2135_v19 = vpop.eup %2134 }
  0xe1   :  { %v234_v20 = vadd.f32 1.0, %v2135_v19 }
  0xe3   :  { %2136 = vrcp.f32 %v234_v20 }
  0xf0   :  { %v2137_v21 = vpop.eup %2136 }
  0xf1   :  { %v238_v24 = vmul.f32 0.0, %v2137_v21 }
 0x151   :  { %v241_v22 = vpop.permute.xlu0 %240 }
 0x152   :  { %v243_v23 = vmul.f32 %v2137_v21, %v241_v22 }
 0x154   :  { %245 = vrot.lane.b32.xlu0 %v243_v23, %s2272_s23 }
 0x1c6   :  { %v246_v25 = vpop.permute.xlu0 %245 }
 0x1c7   :  { %v2367_v26 = vadd.f32 %v246_v25, %v238_v24 }
 0x1c9   :  { %2138 = vtanh.f32 %v2367_v26 }
 0x1d6   :  { %v2139_v33 = vpop.eup %2138 }
 0x1d7   :  { %251 = vrot.lane.b32.xlu1 %v2139_v33, %s2271_s22 }
 0x249   :  { %v252_v34 = vpop.permute.xlu1 %251 }
 0x24a   :  { %v254_v35 = vmul.f32 %v2137_v21, %v252_v34 }
 0x24c   :  { %v255_v36 = vpack.c.bf16 %v254_v35, %v254_v35 }
 0x24e   :  { %309 = vrot.lane.b32.xlu1 %v255_v36, %s2272_s23 }
 0x2c0   :  { %v310_v41 = vpop.permute.xlu1 %309 }
 0x2c1   :  { %1934 = vmatmul.mubr.msk.bf16.vlgmr.msra.gmra.mxu0 %vm84_vm1, %v310_v41  ;;  %1942 = vmatmul.mubr.msk.bf16.vlgmr.msra.gmra.mxu1 %vm84_vm1, %v310_v41 }
 0x2c2   :  { %1954 = vmatpush3.bf16.msra.mxu1 %v2384_v30  ;;  %1946 = vmatpush3.bf16.msra.mxu0 %v2379_v29 }
 0x2c3   :  { %1955 = vmatprep.subr.bf16.mxu1 %v2268_v0  ;;  %1947 = vmatprep.subr.bf16.mxu0 %v2268_v0 }
 0x2c4   :  { %1957 = vmatprep.mubr.msk.bf16.mxu1 %vm2269_vm0, %v2268_v0  ;;  %1949 = vmatprep.mubr.msk.bf16.mxu0 %vm2269_vm0, %v2268_v0 }
 0x2c6   :  { %1956 = vmatpush3.bf16.msra.mxu1 %v2399_v32  ;;  %1948 = vmatpush3.bf16.msra.mxu0 %v2391_v31 }
 0x2c7   :  { %1961 = vmatprep.subr.bf16.mxu0 %v2268_v0  ;;  %1969 = vmatprep.subr.bf16.mxu1 %v2268_v0 }
 0x381   :  { %v360_v50 = vpop.f32.mrf.mxu0  ;;  %v431_v51 = vpop.f32.mrf.mxu1 }
 0x382   :  { %v361_v52 = vadd.f32 %v360_v50, %v302_v37  ;;  %v437_v53 = vadd.f32 %v431_v51, %v135_v48 }
 0x383   :  { %v1935_v54 = vpop.f32.mrf.mxu0  ;;  %v1943_v55 = vpop.f32.mrf.mxu1 }
 0x384   :  { %v372_v56 = vadd.f32 %v2444_v49, %v361_v52  ;;  %2140 = vtanh.f32 %v437_v53  ;;  %v1782_v63 = vmul.f32 -1.442695, %v437_v53  ;;  %v140_v52 = vadd.f32 %v2357_v9, %v2362_v10 }
 0x385   :  { %v363_v57 = vpop.f32.mrf.mxu0  ;;  %v434_v58 = vpop.f32.mrf.mxu1 }
 0x386   :  { %2142 = vtanh.f32 %v372_v56  ;;  %v1780_v1 = vmul.f32 -1.442695, %v372_v56 }
 0x387   :  { %v1936_v59 = vpop.f32.mrf.mxu0  ;;  %v1944_v60 = vpop.f32.mrf.mxu1  ;;  %2144 = vpow2.f32 %v1782_v63 }
 0x388   :  { %2146 = vpow2.f32 %v1780_v1 }
 0x391   :  { %v2141_v61 = vpop.eup %2140 }
 0x392   :  { %447 = vrot.lane.b32.xlu1 %v2141_v61, %s2271_s22 }
 0x393   :  { %v2143_v62 = vpop.eup %2142 }
 0x394   :  { %382 = vrot.lane.b32.xlu0 %v2143_v62, %s2271_s22  ;;  %v2145_v3 = vpop.eup %2144 }
 0x395   :  { %v2147_v5 = vpop.eup %2146  ;;  %v441_v6 = vadd.f32 1.0, %v2145_v3 }
 0x396   :  { %v376_v7 = vadd.f32 1.0, %v2147_v5 }
 0x397   :  { %2148 = vrcp.f32 %v441_v6 }
 0x398   :  { %2150 = vrcp.f32 %v376_v7 }
 0x3a4   :  { %v2149_v8 = vpop.eup %2148 }
 0x3a5   :  { %v2151_v13 = vpop.eup %2150  ;;  %v445_v16 = vmul.f32 %v2149_v8, %v2367_v26 }
 0x3a6   :  { %v380_v19 = vmul.f32 0.0, %v2151_v13 }
 0x404   :  { %v448_v11 = vpop.permute.xlu1 %447 }
 0x405   :  { %v450_v12 = vmul.f32 %v2149_v8, %v448_v11 }
 0x406   :  { %v383_v14 = vpop.permute.xlu0 %382 }
 0x407   :  { %v385_v15 = vmul.f32 %v2151_v13, %v383_v14  ;;  %452 = vrot.lane.b32.xlu1 %v450_v12, %s2272_s23 }
 0x409   :  { %387 = vrot.lane.b32.xlu0 %v385_v15, %s2272_s23 }
 0x479   :  { %v453_v17 = vpop.permute.xlu1 %452 }
 0x47a   :  { %v2452_v18 = vadd.f32 %v453_v17, %v445_v16 }
 0x47b   :  { %v388_v20 = vpop.permute.xlu0 %387 }
 0x47c   :  { %2152 = vtanh.f32 %v2452_v18  ;;  %v2455_v21 = vadd.f32 %v388_v20, %v380_v19 }
 0x47e   :  { %2154 = vtanh.f32 %v2455_v21 }
 0x489   :  { %v2153_v22 = vpop.eup %2152 }
 0x48a   :  { %458 = vrot.lane.b32.xlu1 %v2153_v22, %s2271_s22 }
 0x48b   :  { %v2155_v23 = vpop.eup %2154 }
 0x48c   :  { %393 = vrot.lane.b32.xlu0 %v2155_v23, %s2271_s22 }
 0x4fc   :  { %v459_v24 = vpop.permute.xlu1 %458 }
 0x4fd   :  { %v461_v25 = vmul.f32 %v2149_v8, %v459_v24 }
 0x4fe   :  { %v394_v26 = vpop.permute.xlu0 %393 }
 0x4ff   :  { %v462_v27 = vpack.c.bf16 %v461_v25, %v461_v25  ;;  %v396_v28 = vmul.f32 %v2151_v13, %v394_v26 }
 0x501   :  { %v463_v33 = vpack.c.bf16 %v396_v28, %v396_v28  ;;  %511 = vrot.lane.b32.xlu1 %v462_v27, %s2272_s23 }
 0x503   :  { %465 = vrot.lane.b32.xlu0 %v463_v33, %s2272_s23 }
 0x573   :  { %v512_v34 = vpop.permute.xlu1 %511 }
 0x574   :  { %1958 = vmatmul.mubr.msk.bf16.vlgmr.msra.gmra.mxu1 %vm84_vm1, %v512_v34 }
 0x575   :  { %v466_v35 = vpop.permute.xlu0 %465  ;;  %1970 = vmatpush3.bf16.msra.mxu1 %v2379_v29  ;;  %1973 = vmatprep.mubr.msk.bf16.mxu1 %vm2269_vm0, %v2268_v0 }
 0x576   :  { %1950 = vmatmul.mubr.msk.bf16.vlgmr.msra.gmra.mxu0 %vm84_vm1, %v466_v35  ;;  %1971 = vmatprep.subr.bf16.mxu1 %v2268_v0 }
 0x577   :  { %1962 = vmatpush3.bf16.msra.mxu0 %v2332_v2  ;;  %1965 = vmatprep.mubr.msk.bf16.mxu0 %vm2269_vm0, %v2268_v0 }
 0x578   :  { %1963 = vmatprep.subr.bf16.mxu0 %v2268_v0 }
 0x579   :  { %1972 = vmatpush3.bf16.msra.mxu1 %v2391_v31 }
 0x57a   :  { %1985 = vmatprep.subr.bf16.mxu1 %v2268_v0 }
 0x57b   :  { %1964 = vmatpush3.bf16.msra.mxu0 %v2341_v4 }
 0x57c   :  { %1977 = vmatprep.subr.bf16.mxu0 %v2268_v0 }
 0x57e   :  { %1966 = vmatmul.mubr.msk.bf16.vlgmr.msra.gmra.mxu0 %vm84_vm1, %v512_v34 }
 0x57f   :  { %1978 = vmatpush3.bf16.msra.mxu0 %v2384_v30  ;;  %1981 = vmatprep.mubr.msk.bf16.mxu0 %vm2269_vm0, %v2268_v0 }
 0x580   :  { %1979 = vmatprep.subr.bf16.mxu0 %v2268_v0 }
 0x583   :  { %1980 = vmatpush3.bf16.msra.mxu0 %v2399_v32 }
 0x584   :  { %1993 = vmatprep.subr.bf16.mxu0 %v2268_v0 }
 0x634   :  { %v550_v36 = vpop.f32.mrf.mxu1 }
 0x636   :  { %v504_v37 = vpop.f32.mrf.mxu0  ;;  %v1959_v38 = vpop.f32.mrf.mxu1 }
 0x637   :  { %v551_v39 = vadd.f32 %v550_v36, %v504_v37  ;;  %v143_v37 = vadd.f32 %v2430_v42, %v2362_v10 }
 0x638   :  { %v1951_v40 = vpop.f32.mrf.mxu0  ;;  %v553_v41 = vpop.f32.mrf.mxu1 }
 0x639   :  { %v556_v43 = vadd.f32 %v2444_v49, %v551_v39 }
 0x63a   :  { %v507_v48 = vpop.f32.mrf.mxu0  ;;  %v1960_v50 = vpop.f32.mrf.mxu1 }
 0x63b   :  { %2156 = vtanh.f32 %v556_v43  ;;  %v1785_v60 = vmul.f32 -1.442695, %v556_v43 }
 0x63c   :  { %v1952_v51 = vpop.f32.mrf.mxu0 }
 0x63e   :  { %v615_v53 = vpop.f32.mrf.mxu0 }
 0x63f   :  { %v621_v54 = vadd.f32 %v615_v53, %v140_v52 }
 0x640   :  { %v1967_v55 = vpop.f32.mrf.mxu0 }
 0x641   :  { %2158 = vtanh.f32 %v621_v54  ;;  %v1787_v61 = vmul.f32 -1.442695, %v621_v54 }
 0x642   :  { %v618_v56 = vpop.f32.mrf.mxu0  ;;  %2160 = vpow2.f32 %v1785_v60 }
 0x643   :  { %2162 = vpow2.f32 %v1787_v61 }
 0x644   :  { %v1968_v57 = vpop.f32.mrf.mxu0 }
 0x648   :  { %v2157_v58 = vpop.eup %2156 }
 0x649   :  { %566 = vrot.lane.b32.xlu0 %v2157_v58, %s2271_s22 }
 0x64e   :  { %v2159_v59 = vpop.eup %2158 }
 0x64f   :  { %631 = vrot.lane.b32.xlu1 %v2159_v59, %s2271_s22  ;;  %v2161_v62 = vpop.eup %2160 }
 0x650   :  { %v560_v63 = vadd.f32 1.0, %v2161_v62  ;;  %v2163_v1 = vpop.eup %2162 }
 0x651   :  { %v625_v9 = vadd.f32 1.0, %v2163_v1 }
 0x652   :  { %2164 = vrcp.f32 %v560_v63 }
 0x653   :  { %2166 = vrcp.f32 %v625_v9 }
 0x65f   :  { %v2165_v3 = vpop.eup %2164 }
 0x660   :  { %v2167_v7 = vpop.eup %2166  ;;  %v564_v12 = vmul.f32 %v2165_v3, %v2455_v21 }
 0x661   :  { %v629_v15 = vmul.f32 %v2167_v7, %v2452_v18 }
 0x6bb   :  { %v567_v5 = vpop.permute.xlu0 %566 }
 0x6bc   :  { %v569_v6 = vmul.f32 %v2165_v3, %v567_v5 }
 0x6be   :  { %571 = vrot.lane.b32.xlu0 %v569_v6, %s2272_s23 }
 0x6c1   :  { %v632_v8 = vpop.permute.xlu1 %631 }
 0x6c2   :  { %v634_v11 = vmul.f32 %v2167_v7, %v632_v8 }
 0x6c4   :  { %636 = vrot.lane.b32.xlu1 %v634_v11, %s2272_s23 }
 0x730   :  { %v572_v13 = vpop.permute.xlu0 %571 }
 0x731   :  { %v2491_v14 = vadd.f32 %v572_v13, %v564_v12 }
 0x733   :  { %2168 = vtanh.f32 %v2491_v14 }
 0x736   :  { %v637_v16 = vpop.permute.xlu1 %636 }
 0x737   :  { %v2495_v17 = vadd.f32 %v637_v16, %v629_v15 }
 0x739   :  { %2170 = vtanh.f32 %v2495_v17 }
 0x740   :  { %v2169_v19 = vpop.eup %2168 }
 0x741   :  { %577 = vrot.lane.b32.xlu0 %v2169_v19, %s2271_s22 }
 0x746   :  { %v2171_v20 = vpop.eup %2170 }
 0x747   :  { %642 = vrot.lane.b32.xlu1 %v2171_v20, %s2271_s22 }
 0x7b3   :  { %v578_v22 = vpop.permute.xlu0 %577 }
 0x7b4   :  { %v580_v21 = vmul.f32 %v2165_v3, %v578_v22 }
 0x7b6   :  { %v647_v23 = vpack.c.bf16 %v580_v21, %v580_v21 }
 0x7b8   :  { %649 = vrot.lane.b32.xlu0 %v647_v23, %s2272_s23 }
 0x7b9   :  { %v643_v24 = vpop.permute.xlu1 %642 }
 0x7ba   :  { %v645_v25 = vmul.f32 %v2167_v7, %v643_v24 }
 0x7bc   :  { %v646_v26 = vpack.c.bf16 %v645_v25, %v645_v25 }
 0x7be   :  { %695 = vrot.lane.b32.xlu1 %v646_v26, %s2272_s23 }
 0x82a   :  { %v650_v18 = vpop.permute.xlu0 %649 }
 0x82b   :  { %1974 = vmatmul.mubr.msk.bf16.vlgmr.msra.gmra.mxu1 %vm84_vm1, %v650_v18 }
 0x82c   :  { %1986 = vmatpush3.bf16.msra.mxu1 %v2332_v2  ;;  %1989 = vmatprep.mubr.msk.bf16.mxu1 %vm2269_vm0, %v2268_v0 }
 0x82d   :  { %1987 = vmatprep.subr.bf16.mxu1 %v2268_v0 }
 0x830   :  { %1988 = vmatpush3.bf16.msra.mxu1 %v2341_v4  ;;  %v696_v27 = vpop.permute.xlu1 %695 }
 0x831   :  { %1982 = vmatmul.mubr.msk.bf16.vlgmr.msra.gmra.mxu0 %vm84_vm1, %v696_v27  ;;  %2001 = vmatprep.subr.bf16.mxu1 %v2268_v0 }
 0x832   :  { %1994 = vmatpush3.bf16.msra.mxu0 %v2379_v29  ;;  %1997 = vmatprep.mubr.msk.bf16.mxu0 %vm2269_vm0, %v2268_v0 }
 0x833   :  { %1990 = vmatmul.mubr.msk.bf16.vlgmr.msra.gmra.mxu1 %vm84_vm1, %v696_v27  ;;  %1995 = vmatprep.subr.bf16.mxu0 %v2268_v0 }
 0x834   :  { %2002 = vmatpush3.bf16.msra.mxu1 %v2384_v30  ;;  %2005 = vmatprep.mubr.msk.bf16.mxu1 %vm2269_vm0, %v2268_v0 }
 0x835   :  { %2003 = vmatprep.subr.bf16.mxu1 %v2268_v0 }
 0x836   :  { %1996 = vmatpush3.bf16.msra.mxu0 %v2391_v31 }
 0x837   :  { %2009 = vmatprep.subr.bf16.mxu0 %v2268_v0 }
 0x838   :  { %2004 = vmatpush3.bf16.msra.mxu1 %v2399_v32 }
 0x839   :  { %2017 = vmatprep.subr.bf16.mxu1 %v2268_v0 }
 0x8eb   :  { %v688_v28 = vpop.f32.mrf.mxu1 }
 0x8ed   :  { %v1975_v33 = vpop.f32.mrf.mxu1 }
 0x8ef   :  { %v691_v34 = vpop.f32.mrf.mxu1 }
 0x8f1   :  { %v1976_v35 = vpop.f32.mrf.mxu1  ;;  %v734_v36 = vpop.f32.mrf.mxu0 }
 0x8f2   :  { %v735_v38 = vadd.f32 %v734_v36, %v688_v28  ;;  %v148_v36 = vadd.f32 %v2362_v10, %v2434_v45 }
 0x8f3   :  { %v1983_v39 = vpop.f32.mrf.mxu0  ;;  %v799_v40 = vpop.f32.mrf.mxu1 }
 0x8f4   :  { %v740_v41 = vadd.f32 %v2444_v49, %v735_v38  ;;  %v805_v43 = vadd.f32 %v799_v40, %v143_v37 }
 0x8f5   :  { %v737_v48 = vpop.f32.mrf.mxu0  ;;  %v1991_v50 = vpop.f32.mrf.mxu1 }
 0x8f6   :  { %2172 = vtanh.f32 %v740_v41  ;;  %v1790_v42 = vmul.f32 -1.442695, %v740_v41  ;;  %v1792_v56 = vmul.f32 -1.442695, %v805_v43 }
 0x8f7   :  { %2174 = vtanh.f32 %v805_v43  ;;  %v1984_v51 = vpop.f32.mrf.mxu0  ;;  %v802_v52 = vpop.f32.mrf.mxu1 }
 0x8f8   :  { %2176 = vpow2.f32 %v1790_v42 }
 0x8f9   :  { %v1992_v53 = vpop.f32.mrf.mxu1  ;;  %2178 = vpow2.f32 %v1792_v56 }
 0x903   :  { %v2173_v54 = vpop.eup %2172 }
 0x904   :  { %v2175_v55 = vpop.eup %2174  ;;  %750 = vrot.lane.b32.xlu0 %v2173_v54, %s2271_s22 }
 0x905   :  { %815 = vrot.lane.b32.xlu1 %v2175_v55, %s2271_s22  ;;  %v2177_v57 = vpop.eup %2176 }
 0x906   :  { %v2179_v58 = vpop.eup %2178  ;;  %v744_v59 = vadd.f32 1.0, %v2177_v57 }
 0x907   :  { %v809_v60 = vadd.f32 1.0, %v2179_v58 }
 0x908   :  { %2180 = vrcp.f32 %v744_v59 }
 0x909   :  { %2182 = vrcp.f32 %v809_v60 }
 0x915   :  { %v2181_v61 = vpop.eup %2180 }
 0x916   :  { %v2183_v63 = vpop.eup %2182  ;;  %v748_v5 = vmul.f32 %v2181_v61, %v2491_v14 }
 0x917   :  { %v813_v6 = vmul.f32 %v2183_v63, %v2495_v17 }
 0x976   :  { %v751_v62 = vpop.permute.xlu0 %750 }
 0x977   :  { %v816_v1 = vpop.permute.xlu1 %815  ;;  %v753_v9 = vmul.f32 %v2181_v61, %v751_v62 }
 0x978   :  { %v818_v3 = vmul.f32 %v2183_v63, %v816_v1 }
 0x979   :  { %755 = vrot.lane.b32.xlu0 %v753_v9, %s2272_s23 }
 0x97a   :  { %820 = vrot.lane.b32.xlu1 %v818_v3, %s2272_s23 }
 0x9eb   :  { %v756_v7 = vpop.permute.xlu0 %755 }
 0x9ec   :  { %v821_v8 = vpop.permute.xlu1 %820  ;;  %v2532_v11 = vadd.f32 %v756_v7, %v748_v5 }
 0x9ed   :  { %v2534_v12 = vadd.f32 %v821_v8, %v813_v6 }
 0x9ee   :  { %2184 = vtanh.f32 %v2532_v11 }
 0x9ef   :  { %2186 = vtanh.f32 %v2534_v12 }
 0x9fb   :  { %v2185_v13 = vpop.eup %2184 }
 0x9fc   :  { %v2187_v15 = vpop.eup %2186  ;;  %761 = vrot.lane.b32.xlu0 %v2185_v13, %s2271_s22 }
 0x9fd   :  { %826 = vrot.lane.b32.xlu1 %v2187_v15, %s2271_s22 }
 0xa6e   :  { %v762_v16 = vpop.permute.xlu0 %761 }
 0xa6f   :  { %v827_v14 = vpop.permute.xlu1 %826  ;;  %v764_v19 = vmul.f32 %v2181_v61, %v762_v16 }
 0xa70   :  { %v829_v17 = vmul.f32 %v2183_v63, %v827_v14 }
 0xa71   :  { %v831_v20 = vpack.c.bf16 %v764_v19, %v764_v19 }
 0xa72   :  { %v830_v22 = vpack.c.bf16 %v829_v17, %v829_v17 }
 0xa73   :  { %833 = vrot.lane.b32.xlu0 %v831_v20, %s2272_s23 }
 0xa74   :  { %879 = vrot.lane.b32.xlu1 %v830_v22, %s2272_s23 }
 0xae5   :  { %v834_v21 = vpop.permute.xlu0 %833 }
 0xae6   :  { %v880_v23 = vpop.permute.xlu1 %879  ;;  %1998 = vmatmul.mubr.msk.bf16.vlgmr.msra.gmra.mxu0 %vm84_vm1, %v834_v21 }
 0xae7   :  { %2006 = vmatmul.mubr.msk.bf16.vlgmr.msra.gmra.mxu1 %vm84_vm1, %v880_v23  ;;  %2010 = vmatpush3.bf16.msra.mxu0 %v2332_v2 }
 0xae8   :  { %2011 = vmatprep.subr.bf16.mxu0 %v2268_v0  ;;  %2013 = vmatprep.mubr.msk.bf16.mxu0 %vm2269_vm0, %v2268_v0 }
 0xae9   :  { %2018 = vmatpush3.bf16.msra.mxu1 %v2379_v29  ;;  %2021 = vmatprep.mubr.msk.bf16.mxu1 %vm2269_vm0, %v2268_v0 }
 0xaea   :  { %2019 = vmatprep.subr.bf16.mxu1 %v2268_v0 }
 0xaeb   :  { %2012 = vmatpush3.bf16.msra.mxu0 %v2341_v4 }
 0xaec   :  { %2025 = vmatprep.subr.bf16.mxu0 %v2268_v0 }
 0xaed   :  { %2020 = vmatpush3.bf16.msra.mxu1 %v2391_v31 }
 0xaee   :  { %2014 = vmatmul.mubr.msk.bf16.vlgmr.msra.gmra.mxu0 %vm84_vm1, %v880_v23  ;;  %2033 = vmatprep.subr.bf16.mxu1 %v2268_v0 }
 0xaef   :  { %2026 = vmatpush3.bf16.msra.mxu0 %v2384_v30  ;;  %2029 = vmatprep.mubr.msk.bf16.mxu0 %vm2269_vm0, %v2268_v0 }
 0xaf0   :  { %2027 = vmatprep.subr.bf16.mxu0 %v2268_v0 }
 0xaf3   :  { %2028 = vmatpush3.bf16.msra.mxu0 %v2399_v32 }
 0xaf4   :  { %2041 = vmatprep.subr.bf16.mxu0 %v2268_v0 }
 0xba6   :  { %v872_v24 = vpop.f32.mrf.mxu0 }
 0xba7   :  { %v918_v25 = vpop.f32.mrf.mxu1 }
 0xba8   :  { %v919_v26 = vadd.f32 %v918_v25, %v872_v24  ;;  %v1999_v18 = vpop.f32.mrf.mxu0  ;;  %v151_v24 = vadd.f32 %v2362_v10, %v2438_v47 }
 0xba9   :  { %v2007_v27 = vpop.f32.mrf.mxu1 }
 0xbaa   :  { %v924_v28 = vadd.f32 %v2444_v49, %v919_v26  ;;  %v875_v33 = vpop.f32.mrf.mxu0 }
 0xbab   :  { %v921_v34 = vpop.f32.mrf.mxu1 }
 0xbac   :  { %2188 = vtanh.f32 %v924_v28  ;;  %v2000_v35 = vpop.f32.mrf.mxu0  ;;  %v1795_v51 = vmul.f32 -1.442695, %v924_v28 }
 0xbad   :  { %v2008_v37 = vpop.f32.mrf.mxu1 }
 0xbae   :  { %v983_v38 = vpop.f32.mrf.mxu0 }
 0xbaf   :  { %v989_v39 = vadd.f32 %v983_v38, %v148_v36 }
 0xbb0   :  { %v2015_v40 = vpop.f32.mrf.mxu0 }
 0xbb1   :  { %2190 = vtanh.f32 %v989_v39  ;;  %v1797_v52 = vmul.f32 -1.442695, %v989_v39 }
 0xbb2   :  { %v986_v41 = vpop.f32.mrf.mxu0  ;;  %2192 = vpow2.f32 %v1795_v51 }
 0xbb3   :  { %2194 = vpow2.f32 %v1797_v52 }
 0xbb4   :  { %v2016_v43 = vpop.f32.mrf.mxu0 }
 0xbb9   :  { %v2189_v48 = vpop.eup %2188 }
 0xbba   :  { %934 = vrot.lane.b32.xlu0 %v2189_v48, %s2271_s22 }
 0xbbe   :  { %v2191_v50 = vpop.eup %2190 }
 0xbbf   :  { %999 = vrot.lane.b32.xlu1 %v2191_v50, %s2271_s22  ;;  %v2193_v53 = vpop.eup %2192 }
 0xbc0   :  { %v928_v54 = vadd.f32 1.0, %v2193_v53  ;;  %v2195_v45 = vpop.eup %2194 }
 0xbc1   :  { %v993_v55 = vadd.f32 1.0, %v2195_v45 }
 0xbc2   :  { %2196 = vrcp.f32 %v928_v54 }
 0xbc3   :  { %2198 = vrcp.f32 %v993_v55 }
 0xbcf   :  { %v2197_v42 = vpop.eup %2196 }
 0xbd0   :  { %v2199_v58 = vpop.eup %2198  ;;  %v932_v61 = vmul.f32 %v2197_v42, %v2532_v11 }
 0xbd1   :  { %v997_v1 = vmul.f32 %v2199_v58, %v2534_v12 }
 0xc2c   :  { %v935_v56 = vpop.permute.xlu0 %934 }
 0xc2d   :  { %v937_v57 = vmul.f32 %v2197_v42, %v935_v56 }
 0xc2f   :  { %939 = vrot.lane.b32.xlu0 %v937_v57, %s2272_s23 }
 0xc31   :  { %v1000_v59 = vpop.permute.xlu1 %999 }
 0xc32   :  { %v1002_v60 = vmul.f32 %v2199_v58, %v1000_v59 }
 0xc34   :  { %1004 = vrot.lane.b32.xlu1 %v1002_v60, %s2272_s23 }
 0xca1   :  { %v940_v62 = vpop.permute.xlu0 %939 }
 0xca2   :  { %v2571_v63 = vadd.f32 %v940_v62, %v932_v61 }
 0xca4   :  { %2200 = vtanh.f32 %v2571_v63 }
 0xca6   :  { %v1005_v9 = vpop.permute.xlu1 %1004 }
 0xca7   :  { %v2575_v3 = vadd.f32 %v1005_v9, %v997_v1 }
 0xca9   :  { %2202 = vtanh.f32 %v2575_v3 }
 0xcb1   :  { %v2201_v5 = vpop.eup %2200 }
 0xcb2   :  { %945 = vrot.lane.b32.xlu0 %v2201_v5, %s2271_s22 }
 0xcb6   :  { %v2203_v6 = vpop.eup %2202 }
 0xcb7   :  { %1010 = vrot.lane.b32.xlu1 %v2203_v6, %s2271_s22 }
 0xd24   :  { %v946_v7 = vpop.permute.xlu0 %945 }
 0xd25   :  { %v948_v8 = vmul.f32 %v2197_v42, %v946_v7 }
 0xd27   :  { %v1015_v11 = vpack.c.bf16 %v948_v8, %v948_v8 }
 0xd29   :  { %1017 = vrot.lane.b32.xlu0 %v1015_v11, %s2272_s23  ;;  %v1011_v13 = vpop.permute.xlu1 %1010 }
 0xd2a   :  { %v1013_v15 = vmul.f32 %v2199_v58, %v1011_v13 }
 0xd2c   :  { %v1014_v16 = vpack.c.bf16 %v1013_v15, %v1013_v15 }
 0xd2e   :  { %1063 = vrot.lane.b32.xlu1 %v1014_v16, %s2272_s23  ;;  %v156_v16 = vadd.f32 %v2432_v44, %v2362_v10 }
 0xd9b   :  { %v1018_v12 = vpop.permute.xlu0 %1017 }
 0xd9c   :  { %2022 = vmatmul.mubr.msk.bf16.vlgmr.msra.gmra.mxu1 %vm84_vm1, %v1018_v12 }
 0xd9d   :  { %2034 = vmatpush3.bf16.msra.mxu1 %v2332_v2  ;;  %2037 = vmatprep.mubr.msk.bf16.mxu1 %vm2269_vm0, %v2268_v0 }
 0xd9e   :  { %2035 = vmatprep.subr.bf16.mxu1 %v2268_v0 }
 0xda0   :  { %v1064_v14 = vpop.permute.xlu1 %1063 }
 0xda1   :  { %2036 = vmatpush3.bf16.msra.mxu1 %v2341_v4  ;;  %2030 = vmatmul.mubr.msk.bf16.vlgmr.msra.gmra.mxu0 %vm84_vm1, %v1064_v14 }
 0xda2   :  { %2049 = vmatprep.subr.bf16.mxu1 %v2268_v0  ;;  %2042 = vmatpush3.bf16.msra.mxu0 %v2379_v29 }
 0xda3   :  { %2043 = vmatprep.subr.bf16.mxu0 %v2268_v0  ;;  %2045 = vmatprep.mubr.msk.bf16.mxu0 %vm2269_vm0, %v2268_v0 }
 0xda4   :  { %2038 = vmatmul.mubr.msk.bf16.vlgmr.msra.gmra.mxu1 %vm84_vm1, %v1064_v14 }
 0xda5   :  { %2050 = vmatpush3.bf16.msra.mxu1 %v2384_v30  ;;  %2053 = vmatprep.mubr.msk.bf16.mxu1 %vm2269_vm0, %v2268_v0 }
 0xda6   :  { %2051 = vmatprep.subr.bf16.mxu1 %v2268_v0  ;;  %2044 = vmatpush3.bf16.msra.mxu0 %v2391_v31 }
 0xda7   :  { %2057 = vmatprep.subr.bf16.mxu0 %v2268_v0 }
 0xda9   :  { %2052 = vmatpush3.bf16.msra.mxu1 %v2399_v32 }
 0xdaa   :  { %2065 = vmatprep.subr.bf16.mxu1 %v2268_v0 }
 0xe5c   :  { %v1056_v19 = vpop.f32.mrf.mxu1 }
 0xe5e   :  { %v2023_v17 = vpop.f32.mrf.mxu1 }
 0xe60   :  { %v1059_v20 = vpop.f32.mrf.mxu1 }
 0xe61   :  { %v1102_v22 = vpop.f32.mrf.mxu0 }
 0xe62   :  { %v2024_v21 = vpop.f32.mrf.mxu1  ;;  %v1103_v23 = vadd.f32 %v1102_v22, %v1056_v19 }
 0xe63   :  { %v2031_v25 = vpop.f32.mrf.mxu0 }
 0xe64   :  { %v1108_v26 = vadd.f32 %v2444_v49, %v1103_v23  ;;  %v1167_v18 = vpop.f32.mrf.mxu1 }
 0xe65   :  { %v1173_v27 = vadd.f32 %v1167_v18, %v151_v24  ;;  %v1105_v28 = vpop.f32.mrf.mxu0 }
 0xe66   :  { %2204 = vtanh.f32 %v1108_v26  ;;  %v2039_v33 = vpop.f32.mrf.mxu1  ;;  %v1800_v39 = vmul.f32 -1.442695, %v1108_v26 }
 0xe67   :  { %2206 = vtanh.f32 %v1173_v27  ;;  %v2032_v34 = vpop.f32.mrf.mxu0  ;;  %v1802_v47 = vmul.f32 -1.442695, %v1173_v27 }
 0xe68   :  { %v1170_v35 = vpop.f32.mrf.mxu1  ;;  %2208 = vpow2.f32 %v1800_v39 }
 0xe69   :  { %2210 = vpow2.f32 %v1802_v47 }
 0xe6a   :  { %v2040_v36 = vpop.f32.mrf.mxu1 }
 0xe73   :  { %v2205_v37 = vpop.eup %2204 }
 0xe74   :  { %v2207_v38 = vpop.eup %2206  ;;  %1118 = vrot.lane.b32.xlu0 %v2205_v37, %s2271_s22 }
 0xe75   :  { %1183 = vrot.lane.b32.xlu1 %v2207_v38, %s2271_s22  ;;  %v2209_v40 = vpop.eup %2208 }
 0xe76   :  { %v2211_v41 = vpop.eup %2210  ;;  %v1112_v43 = vadd.f32 1.0, %v2209_v40 }
 0xe77   :  { %v1177_v48 = vadd.f32 1.0, %v2211_v41 }
 0xe78   :  { %2212 = vrcp.f32 %v1112_v43 }
 0xe79   :  { %2214 = vrcp.f32 %v1177_v48 }
 0xe85   :  { %v2213_v50 = vpop.eup %2212 }
 0xe86   :  { %v2215_v52 = vpop.eup %2214  ;;  %v1116_v55 = vmul.f32 %v2213_v50, %v2571_v63 }
 0xe87   :  { %v1181_v42 = vmul.f32 %v2215_v52, %v2575_v3 }
 0xee6   :  { %v1119_v51 = vpop.permute.xlu0 %1118 }
 0xee7   :  { %v1184_v53 = vpop.permute.xlu1 %1183  ;;  %v1121_v54 = vmul.f32 %v2213_v50, %v1119_v51 }
 0xee8   :  { %v1186_v45 = vmul.f32 %v2215_v52, %v1184_v53 }
 0xee9   :  { %1123 = vrot.lane.b32.xlu0 %v1121_v54, %s2272_s23 }
 0xeea   :  { %1188 = vrot.lane.b32.xlu1 %v1186_v45, %s2272_s23 }
 0xf5b   :  { %v1124_v56 = vpop.permute.xlu0 %1123 }
 0xf5c   :  { %v1189_v57 = vpop.permute.xlu1 %1188  ;;  %v2612_v58 = vadd.f32 %v1124_v56, %v1116_v55  ;;  %v2260_v55 = vld [vmem:[%s2735_s2 + $0x8] sm:$0xff]   ;;  %v2261_v56 = vld [vmem:[%s2735_s2] sm:$0xff]  }
 0xf5d   :  { %v2614_v59 = vadd.f32 %v1189_v57, %v1181_v42  ;;  %v2262_v57 = vld [vmem:[%s2738_s5 + $0x8] sm:$0xff]  }
 0xf5e   :  { %2216 = vtanh.f32 %v2612_v58 }
 0xf5f   :  { %2218 = vtanh.f32 %v2614_v59 }
 0xf6b   :  { %v2217_v60 = vpop.eup %2216 }
 0xf6c   :  { %v2219_v61 = vpop.eup %2218  ;;  %1129 = vrot.lane.b32.xlu0 %v2217_v60, %s2271_s22  ;;  %v2265_v60 = vld [vmem:[%s2739_s4] sm:$0xff]  }
 0xf6d   :  { %1194 = vrot.lane.b32.xlu1 %v2219_v61, %s2271_s22 }
 0xfde   :  { %v1130_v62 = vpop.permute.xlu0 %1129 }
 0xfdf   :  { %v1195_v63 = vpop.permute.xlu1 %1194  ;;  %v1132_v1 = vmul.f32 %v2213_v50, %v1130_v62 }
 0xfe0   :  { %v1197_v9 = vmul.f32 %v2215_v52, %v1195_v63 }
 0xfe1   :  { %v1199_v3 = vpack.c.bf16 %v1132_v1, %v1132_v1 }
 0xfe2   :  { %v1198_v5 = vpack.c.bf16 %v1197_v9, %v1197_v9 }
 0xfe3   :  { %1201 = vrot.lane.b32.xlu0 %v1199_v3, %s2272_s23 }
 0xfe4   :  { %1247 = vrot.lane.b32.xlu1 %v1198_v5, %s2272_s23  ;;  %v2266_v5 = vld [vmem:[%s2737_s3] ss:$0 sm:$0xff] }
0x1055   :  { %v1202_v6 = vpop.permute.xlu0 %1201 }
0x1056   :  { %v1248_v7 = vpop.permute.xlu1 %1247  ;;  %2046 = vmatmul.mubr.msk.bf16.vlgmr.msra.gmra.mxu0 %vm84_vm1, %v1202_v6  ;;  %v159_v6 = vadd.f32 %v2266_v5, %v2436_v46  ;;  %v2131_v5 = vld [vmem:[%s2741_s7] sm:$0xff]  }
0x1057   :  { %2054 = vmatmul.mubr.msk.bf16.vlgmr.msra.gmra.mxu1 %vm84_vm1, %v1248_v7  ;;  %2058 = vmatpush3.bf16.msra.mxu0 %v2332_v2 }
0x1058   :  { %2059 = vmatprep.subr.bf16.mxu0 %v2268_v0  ;;  %2061 = vmatprep.mubr.msk.bf16.mxu0 %vm2269_vm0, %v2268_v0 }
0x1059   :  { %2066 = vmatpush3.bf16.msra.mxu1 %v2379_v29  ;;  %2069 = vmatprep.mubr.msk.bf16.mxu1 %vm2269_vm0, %v2268_v0 }
0x105a   :  { %2067 = vmatprep.subr.bf16.mxu1 %v2268_v0 }
0x105b   :  { %2060 = vmatpush3.bf16.msra.mxu0 %v2341_v4 }
0x105c   :  { %2073 = vmatprep.subr.bf16.mxu0 %v2268_v0 }
0x105d   :  { %2068 = vmatpush3.bf16.msra.mxu1 %v2391_v31 }
0x105e   :  { %2062 = vmatmul.mubr.msk.bf16.vlgmr.msra.gmra.mxu0 %vm84_vm1, %v1248_v7  ;;  %2081 = vmatprep.subr.bf16.mxu1 %v2268_v0 }
0x105f   :  { %2074 = vmatpush3.bf16.msra.mxu0 %v2384_v30  ;;  %2077 = vmatprep.mubr.msk.bf16.mxu0 %vm2269_vm0, %v2268_v0 }
0x1060   :  { %2075 = vmatprep.subr.bf16.mxu0 %v2268_v0 }
0x1063   :  { %2076 = vmatpush3.bf16.msra.mxu0 %v2399_v32 }
0x1064   :  { %2089 = vmatprep.subr.bf16.mxu0 %v2268_v0 }
0x1116   :  { %v1240_v2 = vpop.f32.mrf.mxu0 }
0x1117   :  { %v1286_v4 = vpop.f32.mrf.mxu1 }
0x1118   :  { %v1287_v29 = vadd.f32 %v1286_v4, %v1240_v2  ;;  %v2047_v8 = vpop.f32.mrf.mxu0 }
0x1119   :  { %v2055_v31 = vpop.f32.mrf.mxu1 }
0x111a   :  { %v1292_v11 = vadd.f32 %v2444_v49, %v1287_v29  ;;  %v1243_v13 = vpop.f32.mrf.mxu0 }
0x111b   :  { %v1289_v15 = vpop.f32.mrf.mxu1 }
0x111c   :  { %2220 = vtanh.f32 %v1292_v11  ;;  %v2048_v30 = vpop.f32.mrf.mxu0  ;;  %v1805_v23 = vmul.f32 -1.442695, %v1292_v11 }
0x111d   :  { %v2056_v12 = vpop.f32.mrf.mxu1 }
0x111e   :  { %v1351_v14 = vpop.f32.mrf.mxu0 }
0x111f   :  { %v1357_v19 = vadd.f32 %v1351_v14, %v156_v16 }
0x1120   :  { %v2063_v32 = vpop.f32.mrf.mxu0 }
0x1121   :  { %2222 = vtanh.f32 %v1357_v19  ;;  %v1807_v24 = vmul.f32 -1.442695, %v1357_v19 }
0x1122   :  { %v1354_v17 = vpop.f32.mrf.mxu0  ;;  %2224 = vpow2.f32 %v1805_v23 }
0x1123   :  { %2226 = vpow2.f32 %v1807_v24 }
0x1124   :  { %v2064_v20 = vpop.f32.mrf.mxu0 }
0x1129   :  { %v2221_v22 = vpop.eup %2220 }
0x112a   :  { %1302 = vrot.lane.b32.xlu0 %v2221_v22, %s2271_s22 }
0x112e   :  { %v2223_v21 = vpop.eup %2222 }
0x112f   :  { %1367 = vrot.lane.b32.xlu1 %v2223_v21, %s2271_s22  ;;  %v2225_v25 = vpop.eup %2224 }
0x1130   :  { %v1296_v26 = vadd.f32 1.0, %v2225_v25  ;;  %v2227_v10 = vpop.eup %2226 }
0x1131   :  { %v1361_v44 = vadd.f32 1.0, %v2227_v10 }
0x1132   :  { %2228 = vrcp.f32 %v1296_v26 }
0x1133   :  { %2230 = vrcp.f32 %v1361_v44 }
0x113f   :  { %v2229_v18 = vpop.eup %2228 }
0x1140   :  { %v2231_v33 = vpop.eup %2230  ;;  %v1300_v36 = vmul.f32 %v2229_v18, %v2612_v58  ;;  %v2263_v58 = vld [vmem:[%s2739_s4 + $0x8] sm:$0xff]  }
0x1141   :  { %v1365_v39 = vmul.f32 %v2231_v33, %v2614_v59  ;;  %v2264_v59 = vld [vmem:[%s2738_s5] sm:$0xff]  }
0x119c   :  { %v1303_v27 = vpop.permute.xlu0 %1302 }
0x119d   :  { %v1305_v28 = vmul.f32 %v2229_v18, %v1303_v27 }
0x119f   :  { %1307 = vrot.lane.b32.xlu0 %v1305_v28, %s2272_s23 }
0x11a1   :  { %v1368_v34 = vpop.permute.xlu1 %1367 }
0x11a2   :  { %v1370_v35 = vmul.f32 %v2231_v33, %v1368_v34 }
0x11a4   :  { %1372 = vrot.lane.b32.xlu1 %v1370_v35, %s2272_s23 }
0x1211   :  { %v1308_v37 = vpop.permute.xlu0 %1307 }
0x1212   :  { %v2651_v38 = vadd.f32 %v1308_v37, %v1300_v36 }
0x1214   :  { %2232 = vtanh.f32 %v2651_v38 }
0x1216   :  { %v1373_v47 = vpop.permute.xlu1 %1372 }
0x1217   :  { %v2655_v40 = vadd.f32 %v1373_v47, %v1365_v39 }
0x1219   :  { %2234 = vtanh.f32 %v2655_v40 }
0x1221   :  { %v2233_v41 = vpop.eup %2232 }
0x1222   :  { %1313 = vrot.lane.b32.xlu0 %v2233_v41, %s2271_s22 }
0x1226   :  { %v2235_v43 = vpop.eup %2234 }
0x1227   :  { %1378 = vrot.lane.b32.xlu1 %v2235_v43, %s2271_s22 }
0x1294   :  { %v1314_v48 = vpop.permute.xlu0 %1313 }
0x1295   :  { %v1316_v50 = vmul.f32 %v2229_v18, %v1314_v48 }
0x1297   :  { %v1383_v51 = vpack.c.bf16 %v1316_v50, %v1316_v50 }
0x1299   :  { %1385 = vrot.lane.b32.xlu0 %v1383_v51, %s2272_s23  ;;  %v1379_v52 = vpop.permute.xlu1 %1378 }
0x129a   :  { %v1381_v53 = vmul.f32 %v2231_v33, %v1379_v52  ;;  %v2267_v52 = vld [vmem:[%s2740_s6] ss:$0 sm:$0xff] }
0x129c   :  { %v1382_v54 = vpack.c.bf16 %v1381_v53, %v1381_v53 }
0x129e   :  { %1431 = vrot.lane.b32.xlu1 %v1382_v54, %s2272_s23 }
0x130b   :  { %v1386_v45 = vpop.permute.xlu0 %1385 }
0x130c   :  { %2070 = vmatmul.mubr.msk.bf16.vlgmr.msra.gmra.mxu1 %vm84_vm1, %v1386_v45 }
0x130d   :  { %2082 = vmatpush3.bf16.msra.mxu1 %v2260_v55  ;;  %2085 = vmatprep.mubr.msk.bf16.mxu1 %vm2269_vm0, %v2268_v0 }
0x130e   :  { %2083 = vmatprep.subr.bf16.mxu1 %v2268_v0 }
0x1310   :  { %v1432_v42 = vpop.permute.xlu1 %1431 }
0x1311   :  { %2084 = vmatpush3.bf16.msra.mxu1 %v2261_v56  ;;  %2078 = vmatmul.mubr.msk.bf16.vlgmr.msra.gmra.mxu0 %vm84_vm1, %v1432_v42 }
0x1312   :  { %2097 = vmatprep.subr.bf16.mxu1 %v2268_v0  ;;  %2090 = vmatpush3.bf16.msra.mxu0 %v2262_v57 }
0x1313   :  { %2091 = vmatprep.subr.bf16.mxu0 %v2268_v0  ;;  %2093 = vmatprep.mubr.msk.bf16.mxu0 %vm2269_vm0, %v2268_v0 }
0x1314   :  { %2086 = vmatmul.mubr.msk.bf16.vlgmr.msra.gmra.mxu1 %vm84_vm1, %v1432_v42 }
0x1315   :  { %2098 = vmatpush3.bf16.msra.mxu1 %v2263_v58  ;;  %2101 = vmatprep.mubr.msk.bf16.mxu1 %vm2269_vm0, %v2268_v0 }
0x1316   :  { %2099 = vmatprep.subr.bf16.mxu1 %v2268_v0  ;;  %2092 = vmatpush3.bf16.msra.mxu0 %v2264_v59 }
0x1317   :  { %2105 = vmatprep.subr.bf16.mxu0 %v2268_v0 }
0x1319   :  { %2100 = vmatpush3.bf16.msra.mxu1 %v2265_v60 }
0x13cc   :  { %v1424_v61 = vpop.f32.mrf.mxu1 }
0x13ce   :  { %v2071_v62 = vpop.f32.mrf.mxu1 }
0x13d0   :  { %v1427_v63 = vpop.f32.mrf.mxu1 }
0x13d1   :  { %v1470_v1 = vpop.f32.mrf.mxu0 }
0x13d2   :  { %v2072_v9 = vpop.f32.mrf.mxu1  ;;  %v1471_v3 = vadd.f32 %v1470_v1, %v1424_v61 }
0x13d3   :  { %v2079_v7 = vpop.f32.mrf.mxu0 }
0x13d4   :  { %v1476_v2 = vadd.f32 %v2444_v49, %v1471_v3  ;;  %v1535_v4 = vpop.f32.mrf.mxu1  ;;  %v2130_v3 = vld [vmem:[%s2741_s7 + $0x8] sm:$0xff]  }
0x13d5   :  { %v1541_v29 = vadd.f32 %v1535_v4, %v159_v6  ;;  %v1473_v8 = vpop.f32.mrf.mxu0 }
0x13d6   :  { %2236 = vtanh.f32 %v1476_v2  ;;  %v2087_v31 = vpop.f32.mrf.mxu1  ;;  %v1810_v12 = vmul.f32 -1.442695, %v1476_v2  ;;  %v1816_v8 = vld [vmem:[%s2742_s8] ss:$0 sm:$0xff] }
0x13d7   :  { %2238 = vtanh.f32 %v1541_v29  ;;  %v2080_v11 = vpop.f32.mrf.mxu0  ;;  %v1812_v46 = vmul.f32 -1.442695, %v1541_v29 }
0x13d8   :  { %v1538_v13 = vpop.f32.mrf.mxu1  ;;  %2240 = vpow2.f32 %v1810_v12 }
0x13d9   :  { %2242 = vpow2.f32 %v1812_v46 }
0x13da   :  { %v2088_v15 = vpop.f32.mrf.mxu1 }
0x13e3   :  { %v2237_v30 = vpop.eup %2236 }
0x13e4   :  { %v2239_v16 = vpop.eup %2238  ;;  %1486 = vrot.lane.b32.xlu0 %v2237_v30, %s2271_s22 }
0x13e5   :  { %1551 = vrot.lane.b32.xlu1 %v2239_v16, %s2271_s22  ;;  %v2241_v49 = vpop.eup %2240 }
0x13e6   :  { %v2243_v14 = vpop.eup %2242  ;;  %v1480_v19 = vadd.f32 1.0, %v2241_v49 }
0x13e7   :  { %v1545_v32 = vadd.f32 1.0, %v2243_v14 }
0x13e8   :  { %2244 = vrcp.f32 %v1480_v19 }
0x13e9   :  { %2246 = vrcp.f32 %v1545_v32 }
0x13f5   :  { %v2245_v17 = vpop.eup %2244 }
0x13f6   :  { %v2247_v22 = vpop.eup %2246  ;;  %v1484_v25 = vmul.f32 %v2245_v17, %v2651_v38 }
0x13f7   :  { %v1549_v26 = vmul.f32 %v2247_v22, %v2655_v40 }
0x1456   :  { %v1487_v20 = vpop.permute.xlu0 %1486 }
0x1457   :  { %v1552_v21 = vpop.permute.xlu1 %1551  ;;  %v1489_v23 = vmul.f32 %v2245_v17, %v1487_v20 }
0x1458   :  { %v1554_v24 = vmul.f32 %v2247_v22, %v1552_v21 }
0x1459   :  { %1491 = vrot.lane.b32.xlu0 %v1489_v23, %s2272_s23 }
0x145a   :  { %1556 = vrot.lane.b32.xlu1 %v1554_v24, %s2272_s23 }
0x14cb   :  { %v1492_v10 = vpop.permute.xlu0 %1491 }
0x14cc   :  { %v1557_v44 = vpop.permute.xlu1 %1556  ;;  %v1494_v18 = vadd.f32 %v1492_v10, %v1484_v25 }
0x14cd   :  { %v1559_v27 = vadd.f32 %v1557_v44, %v1549_v26 }
0x14ce   :  { %2248 = vtanh.f32 %v1494_v18 }
0x14cf   :  { %2250 = vtanh.f32 %v1559_v27 }
0x14db   :  { %v2249_v28 = vpop.eup %2248 }
0x14dc   :  { %v2251_v33 = vpop.eup %2250  ;;  %1497 = vrot.lane.b32.xlu0 %v2249_v28, %s2271_s22 }
0x14dd   :  { %1562 = vrot.lane.b32.xlu1 %v2251_v33, %s2271_s22 }
0x154e   :  { %v1498_v34 = vpop.permute.xlu0 %1497 }
0x154f   :  { %v1563_v35 = vpop.permute.xlu1 %1562  ;;  %v1500_v36 = vmul.f32 %v2245_v17, %v1498_v34 }
0x1550   :  { %v1565_v37 = vmul.f32 %v2247_v22, %v1563_v35 }
0x1551   :  { %v1567_v39 = vpack.c.bf16 %v1500_v36, %v1500_v36 }
0x1552   :  { %v1566_v38 = vpack.c.bf16 %v1565_v37, %v1565_v37 }
0x1553   :  { %1569 = vrot.lane.b32.xlu0 %v1567_v39, %s2272_s23 }
0x1554   :  { %1615 = vrot.lane.b32.xlu1 %v1566_v38, %s2272_s23 }
0x15c5   :  { %v1570_v47 = vpop.permute.xlu0 %1569 }
0x15c6   :  { %v1616_v40 = vpop.permute.xlu1 %1615  ;;  %2094 = vmatmul.mubr.msk.bf16.vlgmr.msra.gmra.mxu0 %vm84_vm1, %v1570_v47 }
0x15c7   :  { %2102 = vmatmul.mubr.msk.bf16.vlgmr.msra.gmra.mxu1 %vm84_vm1, %v1616_v40  ;;  %2109 = vmatprep.mubr.msk.bf16.mxu0 %vm2269_vm0, %v2268_v0 }
0x15c8   :  { %2106 = vmatpush3.bf16.msra.mxu0 %v2130_v3 }
0x15c9   :  { %2107 = vmatprep.subr.bf16.mxu0 %v2268_v0 }
0x15cc   :  { %2108 = vmatpush3.bf16.msra.mxu0 %v2131_v5 }
0x1686   :  { %v1608_v41 = vpop.f32.mrf.mxu0 }
0x1687   :  { %v1654_v43 = vpop.f32.mrf.mxu1 }
0x1688   :  { %v1655_v48 = vadd.f32 %v1654_v43, %v1608_v41  ;;  %v2095_v50 = vpop.f32.mrf.mxu0 }
0x1689   :  { %v2103_v51 = vpop.f32.mrf.mxu1 }
0x168a   :  { %v1660_v53 = vadd.f32 %v2267_v52, %v1655_v48  ;;  %v1611_v54 = vpop.f32.mrf.mxu0 }
0x168b   :  { %v1657_v45 = vpop.f32.mrf.mxu1 }
0x168c   :  { %2252 = vtanh.f32 %v1660_v53  ;;  %v2096_v55 = vpop.f32.mrf.mxu0  ;;  %v1815_v57 = vmul.f32 -1.442695, %v1660_v53 }
0x168d   :  { %v2104_v42 = vpop.f32.mrf.mxu1 }
0x168e   :  { %2254 = vpow2.f32 %v1815_v57 }
0x1699   :  { %v2253_v56 = vpop.eup %2252 }
0x169a   :  { %1670 = vrot.lane.b32.xlu0 %v2253_v56, %s2271_s22 }
0x169b   :  { %v2255_v58 = vpop.eup %2254 }
0x169c   :  { %v1664_v59 = vadd.f32 1.0, %v2255_v58 }
0x169e   :  { %2256 = vrcp.f32 %v1664_v59 }
0x16ab   :  { %v2257_v60 = vpop.eup %2256 }
0x16ac   :  { %v1668_v63 = vmul.f32 %v2257_v60, %v1494_v18 }
0x170c   :  { %v1671_v61 = vpop.permute.xlu0 %1670 }
0x170d   :  { %v1673_v62 = vmul.f32 %v2257_v60, %v1671_v61 }
0x170f   :  { %1675 = vrot.lane.b32.xlu1 %v1673_v62, %s2272_s23 }
0x1781   :  { %v1676_v1 = vpop.permute.xlu1 %1675 }
0x1782   :  { %v1678_v9 = vadd.f32 %v1676_v1, %v1668_v63 }
0x1784   :  { %2258 = vtanh.f32 %v1678_v9 }
0x1791   :  { %v2259_v6 = vpop.eup %2258 }
0x1792   :  { %1681 = vrot.lane.b32.xlu0 %v2259_v6, %s2271_s22 }
0x1804   :  { %v1682_v7 = vpop.permute.xlu0 %1681 }
0x1805   :  { %v1684_v2 = vmul.f32 %v2257_v60, %v1682_v7 }
0x1807   :  { %v1685_v4 = vpack.c.bf16 %v1684_v2, %v1684_v2 }
0x1809   :  { %1698 = vrot.lane.b32.xlu1 %v1685_v4, %s2272_s23 }
0x187b   :  { %v1699_v29 = vpop.permute.xlu1 %1698 }
0x187c   :  { %2110 = vmatmul.mubr.msk.bf16.vlgmr.msra.gmra.mxu0 %vm84_vm1, %v1699_v29 }
0x193c   :  { %v1749_v31 = vpop.f32.mrf.mxu0 }
0x193d   :  { %v1750_v11 = vadd.f32 %v1816_v8, %v1749_v31 }
0x193e   :  { %v2111_v13 = vpop.f32.mrf.mxu0 }
0x193f   :  { %1755 = vst [vmem:[%s2743_s9] sm:$0xff] %v1750_v11 }
0x1940   :  { %v1752_v0 = vpop.f32.mrf.mxu0 }
0x1942   :  { %v2112_v15 = vpop.f32.mrf.mxu0 }

</bundles_post_ra>
